<compile_context>
chip_gen: v7x
topology: tpu7x:2x2x1
jax: 0.10.0
libtpu: 0.0.40
codegen_flags: <defaults>
</compile_context>

<pallas_src>
import functools
import jax
import jax.numpy as jnp
from jax.experimental import pallas as pl
from jax.experimental.pallas import tpu as pltpu

TILE = 256  # row tile; fine on v5e/v6e/v7x (VMEM use is a few tens of KB)


# ----------------------------------------------------------------------------
# Pallas kernel
# ----------------------------------------------------------------------------
def maxout_kernel(x_ref, w_ref, b_ref, o_ref, *, out_size, pool_size):
    # One fused, lane-dense matmul over all pools: (TILE, in) @ (in, pool*out).
    y = jnp.dot(x_ref[...], w_ref[...], preferred_element_type=jnp.float32)
    y = y + b_ref[...]                                    # f32, (TILE, pool*out)
    # Weight columns are pool-major: new column p*out_size + o corresponds to
    # torch linear output column o*pool_size + p, so the maxout over the pool
    # axis is a max over pool_size contiguous out_size-lane slices.
    m = y[:, 0:out_size]
    for p in range(1, pool_size):
        m = jnp.maximum(m, y[:, p * out_size:(p + 1) * out_size])
    o_ref[...] = m                                        # (TILE, out_size) f32


# ----------------------------------------------------------------------------
# Parameter packing (torch Linear layout -> fused pool-major kernel layout)
# ----------------------------------------------------------------------------
def make_max_params(w_torch, b_torch, out_size, pool_size):
    """w_torch: (out*pool, in), b_torch: (out*pool,) in torch nn.Linear layout."""
    in_size = w_torch.shape[1]
    w_t = w_torch.T                                       # (in, out*pool), col = o*P + p
    # pool-major permutation: new col p*out + o  <-  torch col o*pool + p
    w_pm = w_t.reshape(in_size, out_size, pool_size).transpose(0, 2, 1)
    w_pm = w_pm.reshape(in_size, pool_size * out_size)
    b_pm = b_torch.reshape(out_size, pool_size).T.reshape(1, pool_size * out_size)
    return {
        'w': w_pm.astype(jnp.bfloat16),    # MXU input dtype (f32 accumulation)
        'b': b_pm.astype(jnp.float32),     # added post-accumulation in f32
    }


# ----------------------------------------------------------------------------
# Forward wrapper (== Max.forward)
# ----------------------------------------------------------------------------
def max_forward(inputs, params, out_size, pool_size):
    """inputs: (..., input_size) f32 -> (..., output_size) f32."""
    in_size = inputs.shape[-1]
    lead = inputs.shape[:-1]
    x2d = inputs.reshape(-1, in_size)
    n = x2d.shape[0]
    n_pad = ((n + TILE - 1) // TILE) * TILE
    if n_pad != n:
        # padded rows produce garbage scores that are sliced off below
        x2d = jnp.pad(x2d, ((0, n_pad - n), (0, 0)))
    x2d = x2d.astype(jnp.bfloat16)

    op = out_size * pool_size
    kernel = functools.partial(maxout_kernel, out_size=out_size,
                               pool_size=pool_size)
    out = pl.pallas_call(
        kernel,
        out_shape=jax.ShapeDtypeStruct((n_pad, out_size), jnp.float32),
        grid=(n_pad // TILE,),
        in_specs=[
            pl.BlockSpec((TILE, in_size), lambda i: (i, 0)),   # streamed rows
            pl.BlockSpec((in_size, op), lambda i: (0, 0)),     # weights (VMEM-resident)
            pl.BlockSpec((1, op), lambda i: (0, 0)),           # bias (VMEM-resident)
        ],
        out_specs=pl.BlockSpec((TILE, out_size), lambda i: (i, 0)),
        compiler_params=pltpu.CompilerParams(
            dimension_semantics=("parallel",)),
    )(x2d, params['w'], params['b'])
    return out[:n].reshape(*lead, out_size)


# ----------------------------------------------------------------------------
if __name__ == "__main__":
    INPUT_SIZE, OUTPUT_SIZE, POOL_SIZE = 48, 16, 8   # out*pool = 128 lanes
    BATCH, SEQ = 4, 128                              # 512 rows -> grid of 2 tiles

    key = jax.random.PRNGKey(0)
    kx, kw, kb = jax.random.split(key, 3)
    x = jax.random.normal(kx, (BATCH, SEQ, INPUT_SIZE), jnp.float32)
    # torch nn.Linear default init: U(-1/sqrt(in), 1/sqrt(in))
    bound = 1.0 / (INPUT_SIZE ** 0.5)
    w = jax.random.uniform(kw, (OUTPUT_SIZE * POOL_SIZE, INPUT_SIZE),
                           jnp.float32, -bound, bound)
    b = jax.random.uniform(kb, (OUTPUT_SIZE * POOL_SIZE,),
                           jnp.float32, -bound, bound)

    params = make_max_params(w, b, OUTPUT_SIZE, POOL_SIZE)
    out = max_forward(x, params, OUTPUT_SIZE, POOL_SIZE)
    jax.block_until_ready(out)

    # pure-JAX f32 reference with exact torch semantics (linear -> view -> max)
    ref = x.reshape(-1, INPUT_SIZE) @ w.T + b
    ref = ref.reshape(-1, OUTPUT_SIZE, POOL_SIZE).max(axis=-1)
    ref = ref.reshape(BATCH, SEQ, OUTPUT_SIZE)

    assert out.shape == (BATCH, SEQ, OUTPUT_SIZE)
    # tolerance accounts for bf16 inputs/weights (f32 accumulation)
    assert jnp.allclose(out, ref, atol=5e-2, rtol=5e-2), "kernel/ref mismatch"
    print("KERNEL_OK")
</pallas_src>

<mosaic_0001>
module attributes {stable_mosaic.version = 11 : i64} {
  func.func @maxout_kernel(%arg0: i32, %arg1: memref<256x48xbf16, #tpu.memory_space<vmem>>, %arg2: memref<48x128xbf16, #tpu.memory_space<vmem>>, %arg3: memref<1x128xf32, #tpu.memory_space<vmem>>, %arg4: memref<256x16xf32, #tpu.memory_space<vmem>>) attributes {dimension_semantics = [#tpu.dimension_semantics<parallel>], iteration_bounds = array<i64: 2>, scalar_prefetch = 0 : i64, scratch_operands = 0 : i64, tpu.core_type = #tpu.core_type<tc>, window_params = [{transform_indices = @transform_0, window_bounds = array<i64: 256, 48>}, {pipeline_mode = #tpu.pipeline_mode<synchronous>, transform_indices = @transform_1, window_bounds = array<i64: 48, 128>}, {pipeline_mode = #tpu.pipeline_mode<synchronous>, transform_indices = @transform_2, window_bounds = array<i64: 1, 128>}, {transform_indices = @transform_3, window_bounds = array<i64: 256, 16>}]} {
    %c0 = arith.constant 0 : index
    %c0_0 = arith.constant 0 : index
    %0 = vector.load %arg1[%c0, %c0_0] : memref<256x48xbf16, #tpu.memory_space<vmem>>, vector<256x48xbf16>
    %c0_1 = arith.constant 0 : index
    %c0_2 = arith.constant 0 : index
    %1 = vector.load %arg2[%c0_1, %c0_2] : memref<48x128xbf16, #tpu.memory_space<vmem>>, vector<48x128xbf16>
    %cst = arith.constant dense<0.000000e+00> : vector<256x128xf32>
    %2 = tpu.matmul %0, %1, %cst {dimension_numbers = #tpu.dot_dimension_numbers<[1], [0], [0], [1], [0, 0, 1, 1], [], []>} : vector<256x48xbf16>, vector<48x128xbf16>, vector<256x128xf32> -> vector<256x128xf32>
    %c0_3 = arith.constant 0 : index
    %c0_4 = arith.constant 0 : index
    %3 = vector.load %arg3[%c0_3, %c0_4] : memref<1x128xf32, #tpu.memory_space<vmem>>, vector<1x128xf32>
    %4 = vector.broadcast %3 : vector<1x128xf32> to vector<256x128xf32>
    %5 = arith.addf %2, %4 : vector<256x128xf32>
    %6 = vector.extract_strided_slice %5 {offsets = [0, 0], sizes = [256, 16], strides = [1, 1]} : vector<256x128xf32> to vector<256x16xf32>
    %7 = vector.extract_strided_slice %5 {offsets = [0, 16], sizes = [256, 16], strides = [1, 1]} : vector<256x128xf32> to vector<256x16xf32>
    %8 = arith.maximumf %6, %7 : vector<256x16xf32>
    %9 = vector.extract_strided_slice %5 {offsets = [0, 32], sizes = [256, 16], strides = [1, 1]} : vector<256x128xf32> to vector<256x16xf32>
    %10 = arith.maximumf %8, %9 : vector<256x16xf32>
    %11 = vector.extract_strided_slice %5 {offsets = [0, 48], sizes = [256, 16], strides = [1, 1]} : vector<256x128xf32> to vector<256x16xf32>
    %12 = arith.maximumf %10, %11 : vector<256x16xf32>
    %13 = vector.extract_strided_slice %5 {offsets = [0, 64], sizes = [256, 16], strides = [1, 1]} : vector<256x128xf32> to vector<256x16xf32>
    %14 = arith.maximumf %12, %13 : vector<256x16xf32>
    %15 = vector.extract_strided_slice %5 {offsets = [0, 80], sizes = [256, 16], strides = [1, 1]} : vector<256x128xf32> to vector<256x16xf32>
    %16 = arith.maximumf %14, %15 : vector<256x16xf32>
    %17 = vector.extract_strided_slice %5 {offsets = [0, 96], sizes = [256, 16], strides = [1, 1]} : vector<256x128xf32> to vector<256x16xf32>
    %18 = arith.maximumf %16, %17 : vector<256x16xf32>
    %19 = vector.extract_strided_slice %5 {offsets = [0, 112], sizes = [256, 16], strides = [1, 1]} : vector<256x128xf32> to vector<256x16xf32>
    %20 = arith.maximumf %18, %19 : vector<256x16xf32>
    %c0_5 = arith.constant 0 : index
    %c0_6 = arith.constant 0 : index
    %21 = vector.load %arg4[%c0_5, %c0_6] : memref<256x16xf32, #tpu.memory_space<vmem>>, vector<256x16xf32>
    tpu.vector_store %arg4[%c0_5, %c0_6], %20 {strides = array<i32>} : memref<256x16xf32, #tpu.memory_space<vmem>>, vector<256x16xf32>,
    return
  }
  func.func @transform_0(%arg0: i32) -> (i32, i32) {
    %c0_i32 = arith.constant 0 : i32
    %c0_i32_0 = arith.constant 0 : i32
    return %arg0, %c0_i32 : i32, i32
  }
  func.func @transform_1(%arg0: i32) -> (i32, i32) {
    %c0_i32 = arith.constant 0 : i32
    %c0_i32_0 = arith.constant 0 : i32
    %c0_i32_1 = arith.constant 0 : i32
    return %c0_i32, %c0_i32_0 : i32, i32
  }
  func.func @transform_2(%arg0: i32) -> (i32, i32) {
    %c0_i32 = arith.constant 0 : i32
    %c0_i32_0 = arith.constant 0 : i32
    %c0_i32_1 = arith.constant 0 : i32
    return %c0_i32, %c0_i32_0 : i32, i32
  }
  func.func @transform_3(%arg0: i32) -> (i32, i32) {
    %c0_i32 = arith.constant 0 : i32
    %c0_i32_0 = arith.constant 0 : i32
    return %arg0, %c0_i32 : i32, i32
  }
}

</mosaic_0001>

<bundles_post_ra>
// kernel: tpu_custom_call.1
= control target key start
LH: loop header
LB: loop body
LE: loop exit
PB: predicated region body
PF: predicated region fallthrough
CT: control target
= control target key end

     0   :  { %s1724_s12 = smov 0   ;;  %s3071_s0 = inlined_call_operand.vmem [shape: bf16[512,48], index: 0, kind: input, shape index: {}]   ;;  %s3072_s1 = inlined_call_operand.vmem [shape: bf16[48,128], index: 1, kind: input, shape index: {}]   ;;  %s3073_s2 = inlined_call_operand.vmem [shape: f32[1,128], index: 2, kind: input, shape index: {}]   ;;  %s3074_s3 = inlined_call_operand.vmem [shape: f32[512,16], index: 3, kind: output, shape index: {}]  }
   0x1 LB: > { %s1545_s13 = sadd.s32 4294967295, %s1695_s12   ;;  %p1549_p0 = scmp.ge.s32.totalorder %s1695_s12, 1  ;;  %s1695_s12 = sphi %s1724_s12, %s13_s12  }
   0x2   : > { %p138_p1 = scmp.lt.s32.totalorder %s1695_s12, 3 }
   0x4   : > { %p139_p2 = pnand %p1549_p0, %p138_p1 }
   0x6   : > { %142 = sbr.rel (%p139_p2) target bundleno = 802 (0x322), region = 32 }
   0xd   : > { %v1670_v0 = vld [vmem:[%s3072_s1] sm:$0xff]   ;;  %s1550_s16 = sshll.u32 %s1545_s13, 5  ;;  %v1671_v1 = vld [vmem:[%s3072_s1 + $0x8] sm:$0xff]   ;;  %v1672_v2 = vld [vmem:[%s3072_s1 + $0x10] sm:$0xff]   ;;  %vm318_vm0 = vcmask 392192   ;;  %s1697_s27 = smov 112  }
   0xe   : > { %p163_p3 = scmp.lt.s32.totalorder %s1550_s16, 63  ;;  %1611 = vmatprep.subr.bf16.mxu0 %v1670_v0  ;;  %1649 = vmatprep.subr.bf16.mxu1 %v1670_v0  ;;  %v1784_v19 = vld [vmem:[%s3073_s2] ss:$0 sm:$0xff]  ;;  %s1698_s28 = smov 96   ;;  %vm1456_vm1 = vcmask 130048  }
   0xf   : > { %1612 = vmatpush3.bf16.msra.mxu0 %v1670_v0  ;;  %1652 = vmatpush3.bf16.msra.mxu1 %v1670_v0  ;;  %s1699_s29 = smov 80   ;;  %s1700_s30 = smov 64  }
  0x10   : > { %s3400_s16 = smov (!%p163_p3, %s1550_s16), 63  ;;  %1613 = vmatprep.subr.bf16.mxu0 %v1671_v1  ;;  %1650 = vmatprep.subr.bf16.mxu1 %v1671_v1  ;;  %s1701_s4 = smov 48  }
  0x11   : > { %s1551_s21 = sshll.u32 %s3400_s16, 2  ;;  %s1702_s5 = smov 32  }
  0x12   : > { %s1747_s24 = scalar_lea.vmem %s3071_s0, %s1551_s21  ;;  %s1703_s6 = smov 16  }
  0x13   : > { %1614 = vmatpush3.bf16.msra.mxu0 %v1671_v1  ;;  %1653 = vmatpush3.bf16.msra.mxu1 %v1671_v1  ;;  %v1673_v3 = vld [vmem:[%s1747_s24] sm:$0xff]   ;;  %v1675_v5 = vld [vmem:[%s1747_s24 + $0x8] sm:$0xff]   ;;  %v1677_v7 = vld [vmem:[%s1747_s24 + $0x10] sm:$0xff]   ;;  %s1553_s7 = sshll.u32 %s3400_s16, 3 }
  0x14   : > { %1615 = vmatprep.subr.bf16.mxu0 %v1672_v2  ;;  %1651 = vmatprep.subr.bf16.mxu1 %v1672_v2  ;;  %v1674_v4 = vld [vmem:[%s1747_s24 + $0x40] sm:$0xff]   ;;  %v1676_v6 = vld [vmem:[%s1747_s24 + $0x48] sm:$0xff]   ;;  %v1679_v8 = vld [vmem:[%s1747_s24 + $0x50] sm:$0xff]   ;;  %s2823_s10 = scalar_lea.vmem %s3074_s3, %s1553_s7 }
  0x15   : > { %1617 = vmatprep.mubr.msk.bf16.mxu0 %vm318_vm0, %v1673_v3  ;;  %1633 = vmatprep.mubr.msk.bf16.mxu1 %vm318_vm0, %v1674_v4  ;;  %v1678_v9 = vld [vmem:[%s1747_s24 + $0x18] sm:$0xff]   ;;  %v1681_v11 = vld [vmem:[%s1747_s24 + $0x20] sm:$0xff]   ;;  %v1682_v13 = vld [vmem:[%s1747_s24 + $0x28] sm:$0xff]  }
  0x16   : > { %v1680_v10 = vld [vmem:[%s1747_s24 + $0x58] sm:$0xff]   ;;  %v1683_v12 = vld [vmem:[%s1747_s24 + $0x60] sm:$0xff]   ;;  %v1684_v14 = vld [vmem:[%s1747_s24 + $0x68] sm:$0xff]  }
  0x17   : > { %1616 = vmatpush3.bf16.msra.mxu0 %v1672_v2  ;;  %1654 = vmatpush3.bf16.msra.mxu1 %v1672_v2  ;;  %v1685_v15 = vld [vmem:[%s1747_s24 + $0x30] sm:$0xff]   ;;  %v1686_v17 = vld [vmem:[%s1747_s24 + $0x38] sm:$0xff]  }
  0x18   : > { %v1687_v16 = vld [vmem:[%s1747_s24 + $0x70] sm:$0xff]   ;;  %v1688_v18 = vld [vmem:[%s1747_s24 + $0x78] sm:$0xff]  }
  0x1a   : > { %1618 = vmatmul.mubr.msk.bf16.vlgmr.msra.gmra.mrb[0].mxu0 %vm318_vm0, %v1675_v5  ;;  %1634 = vmatmul.mubr.msk.bf16.vlgmr.msra.gmra.mrb[0].mxu1 %vm318_vm0, %v1676_v6 }
  0x1b   : > { %1621 = vmatprep.mubr.msk.bf16.mxu0 %vm318_vm0, %v1677_v7  ;;  %1637 = vmatprep.mubr.msk.bf16.mxu1 %vm318_vm0, %v1679_v8 }
  0x22   : > { %1622 = vmatmul.mubr.msk.bf16.gmra.mrb[4].mxu0 %vm318_vm0, %v1678_v9  ;;  %1638 = vmatmul.mubr.msk.bf16.gmra.mrb[4].mxu1 %vm318_vm0, %v1680_v10 }
  0x23   : > { %1625 = vmatprep.mubr.msk.bf16.mxu0 %vm318_vm0, %v1681_v11  ;;  %1641 = vmatprep.mubr.msk.bf16.mxu1 %vm318_vm0, %v1683_v12 }
  0x2a   : > { %1626 = vmatmul.mubr.msk.bf16.gmra.mrb[8].mxu0 %vm318_vm0, %v1682_v13  ;;  %1642 = vmatmul.mubr.msk.bf16.gmra.mrb[8].mxu1 %vm318_vm0, %v1684_v14 }
  0x2b   : > { %1629 = vmatprep.mubr.msk.bf16.mxu0 %vm318_vm0, %v1685_v15  ;;  %1645 = vmatprep.mubr.msk.bf16.mxu1 %vm318_vm0, %v1687_v16 }
  0x32   : > { %1630 = vmatmul.mubr.msk.bf16.gmra.mrb[12].mxu0 %vm318_vm0, %v1686_v17  ;;  %1646 = vmatmul.mubr.msk.bf16.gmra.mrb[12].mxu1 %vm318_vm0, %v1688_v18 }
  0xed   : > { %v1619_v20 = vpop.f32.mrb[0].mxu0  ;;  %v1635_v21 = vpop.f32.mrb[0].mxu1 }
  0xee   : > { %v1787_v22 = vadd.f32 %v1619_v20, %v1784_v19  ;;  %v1790_v23 = vadd.f32 %v1635_v21, %v1784_v19  ;;  %v401_v24 = vpop.f32.mrb[1].mxu0  ;;  %v465_v25 = vpop.f32.mrb[1].mxu1 }
  0xef   : > { %v1620_v26 = vpop.f32.mrb[2].mxu0  ;;  %v1636_v27 = vpop.f32.mrb[2].mxu1  ;;  %v1851_v48 = vadd.f32 %v1784_v19, %v401_v24  ;;  %v1858_v49 = vadd.f32 %v1784_v19, %v465_v25 }
  0xf0   : > { %596 = vrot.lane.b32.xlu0 %v1790_v23, %s1697_s27  ;;  %v468_v28 = vpop.f32.mrb[3].mxu1  ;;  %564 = vrot.lane.b32.xlu1 %v1787_v22, %s1697_s27  ;;  %v404_v29 = vpop.f32.mrb[3].mxu0  ;;  %v1797_v30 = vadd.f32 %v1620_v26, %v1784_v19  ;;  %v1804_v33 = vadd.f32 %v1636_v27, %v1784_v19 }
  0xf1   : > { %v1865_v50 = vadd.f32 %v1784_v19, %v468_v28  ;;  %v1872_v51 = vadd.f32 %v1784_v19, %v404_v29 }
  0xf4   : > { %692 = vrot.lane.b32.xlu0 %v1787_v22, %s1698_s28  ;;  %566 = vrot.lane.b32.xlu1 %v1797_v30, %s1697_s27 }
  0xf5   : > { %v1623_v31 = vpop.f32.mrb[4].mxu0  ;;  %v1639_v32 = vpop.f32.mrb[4].mxu1 }
  0xf6   : > { %v1806_v34 = vpop.f32.mrb[5].mxu0  ;;  %v1808_v35 = vpop.f32.mrb[5].mxu1  ;;  %v1909_v57 = vadd.f32 %v1623_v31, %v1784_v19  ;;  %v1925_v62 = vadd.f32 %v1639_v32, %v1784_v19 }
  0xf7   : > { %v1624_v36 = vpop.f32.mrb[6].mxu0  ;;  %v1640_v37 = vpop.f32.mrb[6].mxu1  ;;  %v1960_v0 = vadd.f32 %v1784_v19, %v1806_v34  ;;  %v1972_v2 = vadd.f32 %v1784_v19, %v1808_v35 }
  0xf8   : > { %724 = vrot.lane.b32.xlu0 %v1790_v23, %s1698_s28  ;;  %598 = vrot.lane.b32.xlu1 %v1804_v33, %s1697_s27  ;;  %v1814_v38 = vpop.f32.mrb[7].mxu0  ;;  %v1816_v39 = vpop.f32.mrb[7].mxu1  ;;  %v1912_v58 = vadd.f32 %v1624_v36, %v1784_v19  ;;  %3088 = vst [vmem:[#allocation2_spill] sm:$0xff] %v1925_v62  ;;  %v1928_v63 = vadd.f32 %v1640_v37, %v1784_v19 }
  0xf9   : > { %v1964_v1 = vadd.f32 %v1784_v19, %v1814_v38  ;;  %3090 = vst [vmem:[#allocation4_spill] sm:$0xff] %v1972_v2  ;;  %v1976_v3 = vadd.f32 %v1784_v19, %v1816_v39 }
  0xfa   : > { %3089 = vst [vmem:[#allocation3_spill] sm:$0xff] %v1928_v63 }
  0xfc   : > { %820 = vrot.lane.b32.xlu0 %v1787_v22, %s1699_s29  ;;  %694 = vrot.lane.b32.xlu1 %v1797_v30, %s1698_s28 }
  0xfd   : > { %v1822_v40 = vpop.f32.mrb[8].mxu0  ;;  %v1824_v41 = vpop.f32.mrb[8].mxu1 }
  0xfe   : > { %v1826_v42 = vpop.f32.mrb[9].mxu0  ;;  %v1828_v43 = vpop.f32.mrb[9].mxu1  ;;  %v2020_v10 = vadd.f32 %v1822_v40, %v1784_v19  ;;  %v2036_v14 = vadd.f32 %v1824_v41, %v1784_v19 }
  0xff   : > { %v1830_v44 = vpop.f32.mrb[10].mxu0  ;;  %v1832_v45 = vpop.f32.mrb[10].mxu1  ;;  %v2100_v35 = vadd.f32 %v1784_v19, %v1826_v42  ;;  %v2116_v39 = vadd.f32 %v1784_v19, %v1828_v43 }
 0x100   : > { %852 = vrot.lane.b32.xlu0 %v1790_v23, %s1699_s29  ;;  %726 = vrot.lane.b32.xlu1 %v1804_v33, %s1698_s28  ;;  %v1838_v46 = vpop.f32.mrb[11].mxu0  ;;  %v1840_v47 = vpop.f32.mrb[11].mxu1  ;;  %v2024_v11 = vadd.f32 %v1830_v44, %v1784_v19  ;;  %3094 = vst [vmem:[#allocation8_spill] sm:$0xff] %v2036_v14  ;;  %v2040_v15 = vadd.f32 %v1832_v45, %v1784_v19 }
 0x101   : > { %v2104_v36 = vadd.f32 %v1784_v19, %v1838_v46  ;;  %3108 = vst [vmem:[#allocation22_spill] sm:$0xff] %v2116_v39  ;;  %v2120_v40 = vadd.f32 %v1784_v19, %v1840_v47 }
 0x102   : > { %3095 = vst [vmem:[#allocation9_spill] sm:$0xff] %v2040_v15 }
 0x103   : > { %3109 = vst [vmem:[#allocation23_spill] sm:$0xff] %v2120_v40 }
 0x104   : > { %948 = vrot.lane.b32.xlu0 %v1787_v22, %s1700_s30  ;;  %822 = vrot.lane.b32.xlu1 %v1797_v30, %s1699_s29 }
 0x105   : > { %v1894_v52 = vpop.f32.mrb[12].mxu0  ;;  %v1904_v55 = vpop.f32.mrb[12].mxu1 }
 0x106   : > { %v1896_v53 = vpop.f32.mrb[13].mxu0  ;;  %v1914_v59 = vpop.f32.mrb[13].mxu1 }
 0x107   : > { %v1902_v54 = vpop.f32.mrb[14].mxu0  ;;  %v1920_v60 = vpop.f32.mrb[14].mxu1 }
 0x108   : > { %980 = vrot.lane.b32.xlu0 %v1790_v23, %s1700_s30  ;;  %854 = vrot.lane.b32.xlu1 %v1804_v33, %s1699_s29  ;;  %v1906_v56 = vpop.f32.mrb[15].mxu0  ;;  %v1922_v61 = vpop.f32.mrb[15].mxu1 }
 0x10c   : > { %950 = vrot.lane.b32.xlu1 %v1797_v30, %s1700_s30  ;;  %560 = vrot.lane.b32.xlu0 %v1851_v48, %s1697_s27 }
 0x110   : > { %982 = vrot.lane.b32.xlu1 %v1804_v33, %s1700_s30  ;;  %592 = vrot.lane.b32.xlu0 %v1858_v49, %s1697_s27 }
 0x114   : > { %594 = vrot.lane.b32.xlu1 %v1865_v50, %s1697_s27  ;;  %688 = vrot.lane.b32.xlu0 %v1851_v48, %s1698_s28 }
 0x118   : > { %690 = vrot.lane.b32.xlu1 %v1872_v51, %s1698_s28  ;;  %720 = vrot.lane.b32.xlu0 %v1858_v49, %s1698_s28 }
 0x11c   : > { %722 = vrot.lane.b32.xlu1 %v1865_v50, %s1698_s28  ;;  %816 = vrot.lane.b32.xlu0 %v1851_v48, %s1699_s29 }
 0x120   : > { %818 = vrot.lane.b32.xlu1 %v1872_v51, %s1699_s29  ;;  %848 = vrot.lane.b32.xlu0 %v1858_v49, %s1699_s29 }
 0x124   : > { %850 = vrot.lane.b32.xlu1 %v1865_v50, %s1699_s29  ;;  %944 = vrot.lane.b32.xlu0 %v1851_v48, %s1700_s30 }
 0x128   : > { %946 = vrot.lane.b32.xlu1 %v1872_v51, %s1700_s30  ;;  %976 = vrot.lane.b32.xlu0 %v1858_v49, %s1700_s30 }
 0x12c   : > { %978 = vrot.lane.b32.xlu1 %v1865_v50, %s1700_s30  ;;  %562 = vrot.lane.b32.xlu0 %v1872_v51, %s1697_s27 }
 0x130   : > { %574 = vrot.lane.b32.xlu1 %v1912_v58, %s1697_s27  ;;  %572 = vrot.lane.b32.xlu0 %v1909_v57, %s1697_s27 }
 0x134   : > { %606 = vrot.lane.b32.xlu1 %v1928_v63, %s1697_s27  ;;  %604 = vrot.lane.b32.xlu0 %v1925_v62, %s1697_s27 }
 0x138   : > { %702 = vrot.lane.b32.xlu1 %v1912_v58, %s1698_s28  ;;  %700 = vrot.lane.b32.xlu0 %v1909_v57, %s1698_s28 }
 0x13c   : > { %734 = vrot.lane.b32.xlu1 %v1928_v63, %s1698_s28  ;;  %732 = vrot.lane.b32.xlu0 %v1925_v62, %s1698_s28 }
 0x140   : > { %830 = vrot.lane.b32.xlu1 %v1912_v58, %s1699_s29  ;;  %828 = vrot.lane.b32.xlu0 %v1909_v57, %s1699_s29 }
 0x144   : > { %862 = vrot.lane.b32.xlu1 %v1928_v63, %s1699_s29  ;;  %860 = vrot.lane.b32.xlu0 %v1925_v62, %s1699_s29 }
 0x148   : > { %958 = vrot.lane.b32.xlu1 %v1912_v58, %s1700_s30  ;;  %956 = vrot.lane.b32.xlu0 %v1909_v57, %s1700_s30 }
 0x14c   : > { %990 = vrot.lane.b32.xlu1 %v1928_v63, %s1700_s30  ;;  %988 = vrot.lane.b32.xlu0 %v1925_v62, %s1700_s30 }
 0x150   : > { %570 = vrot.lane.b32.xlu1 %v1964_v1, %s1697_s27  ;;  %568 = vrot.lane.b32.xlu0 %v1960_v0, %s1697_s27 }
 0x154   : > { %602 = vrot.lane.b32.xlu1 %v1976_v3, %s1697_s27  ;;  %600 = vrot.lane.b32.xlu0 %v1972_v2, %s1697_s27 }
 0x158   : > { %698 = vrot.lane.b32.xlu1 %v1964_v1, %s1698_s28  ;;  %696 = vrot.lane.b32.xlu0 %v1960_v0, %s1698_s28 }
 0x15c   : > { %730 = vrot.lane.b32.xlu1 %v1976_v3, %s1698_s28  ;;  %728 = vrot.lane.b32.xlu0 %v1972_v2, %s1698_s28 }
 0x160   : > { %826 = vrot.lane.b32.xlu1 %v1964_v1, %s1699_s29  ;;  %824 = vrot.lane.b32.xlu0 %v1960_v0, %s1699_s29 }
 0x162   : > { %v1994_v4 = vpop.permute.xlu0 %596  ;;  %v1996_v5 = vpop.permute.xlu1 %564 }
 0x163   : > { %3091 = vst [vmem:[#allocation5_spill] sm:$0xff] %v1994_v4 }
 0x164   : > { %858 = vrot.lane.b32.xlu1 %v1976_v3, %s1699_s29  ;;  %856 = vrot.lane.b32.xlu0 %v1972_v2, %s1699_s29 }
 0x166   : > { %v2002_v6 = vpop.permute.xlu0 %692  ;;  %v2004_v7 = vpop.permute.xlu1 %566 }
 0x168   : > { %954 = vrot.lane.b32.xlu1 %v1964_v1, %s1700_s30  ;;  %952 = vrot.lane.b32.xlu0 %v1960_v0, %s1700_s30 }
 0x16a   : > { %v2010_v8 = vpop.permute.xlu0 %724  ;;  %v2012_v9 = vpop.permute.xlu1 %598 }
 0x16b   : > { %3092 = vst [vmem:[#allocation6_spill] sm:$0xff] %v2010_v8  ;;  %3093 = vst [vmem:[#allocation7_spill] sm:$0xff] %v2012_v9  ;;  %v2176_v8 = vadd.f32 %v1894_v52, %v1784_v19  ;;  %v2196_v52 = vadd.f32 %v1902_v54, %v1784_v19 }
 0x16c   : > { %986 = vrot.lane.b32.xlu1 %v1976_v3, %s1700_s30  ;;  %984 = vrot.lane.b32.xlu0 %v1972_v2, %s1700_s30 }
 0x16e   : > { %v2026_v12 = vpop.permute.xlu0 %820  ;;  %v2028_v13 = vpop.permute.xlu1 %694 }
 0x170   : > { %582 = vrot.lane.b32.xlu1 %v2024_v11, %s1697_s27  ;;  %580 = vrot.lane.b32.xlu0 %v2020_v10, %s1697_s27 }
 0x172   : > { %v2042_v16 = vpop.permute.xlu0 %852  ;;  %v2044_v17 = vpop.permute.xlu1 %726 }
 0x173   : > { %3096 = vst [vmem:[#allocation10_spill] sm:$0xff] %v2042_v16  ;;  %3097 = vst [vmem:[#allocation11_spill] sm:$0xff] %v2044_v17 }
 0x174   : > { %614 = vrot.lane.b32.xlu1 %v2040_v15, %s1697_s27  ;;  %612 = vrot.lane.b32.xlu0 %v2036_v14, %s1697_s27 }
 0x176   : > { %v2050_v18 = vpop.permute.xlu0 %948  ;;  %v2052_v20 = vpop.permute.xlu1 %822 }
 0x177   : > { %3098 = vst [vmem:[#allocation12_spill] sm:$0xff] %v2050_v18  ;;  %3099 = vst [vmem:[#allocation13_spill] sm:$0xff] %v2052_v20 }
 0x178   : > { %710 = vrot.lane.b32.xlu1 %v2024_v11, %s1698_s28  ;;  %708 = vrot.lane.b32.xlu0 %v2020_v10, %s1698_s28 }
 0x17a   : > { %v2058_v21 = vpop.permute.xlu0 %980  ;;  %v2060_v24 = vpop.permute.xlu1 %854 }
 0x17b   : > { %3100 = vst [vmem:[#allocation14_spill] sm:$0xff] %v2058_v21  ;;  %3101 = vst [vmem:[#allocation15_spill] sm:$0xff] %v2060_v24 }
 0x17c   : > { %742 = vrot.lane.b32.xlu1 %v2040_v15, %s1698_s28  ;;  %740 = vrot.lane.b32.xlu0 %v2036_v14, %s1698_s28 }
 0x17e   : > { %v2066_v25 = vpop.permute.xlu1 %950  ;;  %v2068_v26 = vpop.permute.xlu0 %560 }
 0x17f   : > { %3102 = vst [vmem:[#allocation16_spill] sm:$0xff] %v2066_v25 }
 0x180   : > { %838 = vrot.lane.b32.xlu1 %v2024_v11, %s1699_s29  ;;  %836 = vrot.lane.b32.xlu0 %v2020_v10, %s1699_s29 }
 0x182   : > { %v2074_v27 = vpop.permute.xlu1 %982  ;;  %v2076_v28 = vpop.permute.xlu0 %592 }
 0x183   : > { %3103 = vst [vmem:[#allocation17_spill] sm:$0xff] %v2074_v27  ;;  %3104 = vst [vmem:[#allocation18_spill] sm:$0xff] %v2076_v28 }
 0x184   : > { %870 = vrot.lane.b32.xlu1 %v2040_v15, %s1699_s29  ;;  %868 = vrot.lane.b32.xlu0 %v2036_v14, %s1699_s29 }
 0x186   : > { %v2082_v29 = vpop.permute.xlu1 %594  ;;  %v2084_v31 = vpop.permute.xlu0 %688 }
 0x187   : > { %3105 = vst [vmem:[#allocation19_spill] sm:$0xff] %v2082_v29 }
 0x188   : > { %966 = vrot.lane.b32.xlu1 %v2024_v11, %s1700_s30  ;;  %964 = vrot.lane.b32.xlu0 %v2020_v10, %s1700_s30 }
 0x18a   : > { %v2090_v32 = vpop.permute.xlu1 %690  ;;  %v2092_v34 = vpop.permute.xlu0 %720 }
 0x18b   : > { %3106 = vst [vmem:[#allocation20_spill] sm:$0xff] %v2092_v34 }
 0x18c   : > { %998 = vrot.lane.b32.xlu1 %v2040_v15, %s1700_s30  ;;  %996 = vrot.lane.b32.xlu0 %v2036_v14, %s1700_s30 }
 0x18e   : > { %v2106_v37 = vpop.permute.xlu1 %722  ;;  %v2108_v38 = vpop.permute.xlu0 %816 }
 0x18f   : > { %3107 = vst [vmem:[#allocation21_spill] sm:$0xff] %v2106_v37 }
 0x190   : > { %578 = vrot.lane.b32.xlu1 %v2104_v36, %s1697_s27  ;;  %576 = vrot.lane.b32.xlu0 %v2100_v35, %s1697_s27 }
 0x192   : > { %v2122_v41 = vpop.permute.xlu1 %818  ;;  %v2124_v42 = vpop.permute.xlu0 %848 }
 0x193   : > { %3110 = vst [vmem:[#allocation24_spill] sm:$0xff] %v2124_v42 }
 0x194   : > { %610 = vrot.lane.b32.xlu1 %v2120_v40, %s1697_s27  ;;  %608 = vrot.lane.b32.xlu0 %v2116_v39, %s1697_s27 }
 0x196   : > { %v2130_v44 = vpop.permute.xlu1 %850  ;;  %v2132_v45 = vpop.permute.xlu0 %944 }
 0x197   : > { %3111 = vst [vmem:[#allocation25_spill] sm:$0xff] %v2130_v44  ;;  %v2188_v44 = vadd.f32 %v1904_v55, %v1784_v19  ;;  %v2208_v55 = vadd.f32 %v1920_v60, %v1784_v19 }
 0x198   : > { %706 = vrot.lane.b32.xlu1 %v2104_v36, %s1698_s28  ;;  %704 = vrot.lane.b32.xlu0 %v2100_v35, %s1698_s28 }
 0x199   : > { %3122 = vst [vmem:[#allocation36_spill] sm:$0xff] %v2188_v44  ;;  %3125 = vst [vmem:[#allocation39_spill] sm:$0xff] %v2208_v55 }
 0x19a   : > { %v2138_v43 = vpop.permute.xlu1 %946  ;;  %v2140_v46 = vpop.permute.xlu0 %976 }
 0x19b   : > { %3112 = vst [vmem:[#allocation26_spill] sm:$0xff] %v2140_v46 }
 0x19c   : > { %738 = vrot.lane.b32.xlu1 %v2120_v40, %s1698_s28  ;;  %736 = vrot.lane.b32.xlu0 %v2116_v39, %s1698_s28 }
 0x19e   : > { %v2146_v47 = vpop.permute.xlu1 %978  ;;  %v2148_v27 = vpop.permute.xlu0 %562 }
 0x19f   : > { %3113 = vst [vmem:[#allocation27_spill] sm:$0xff] %v2146_v47 }
 0x1a0   : > { %834 = vrot.lane.b32.xlu1 %v2104_v36, %s1699_s29  ;;  %832 = vrot.lane.b32.xlu0 %v2100_v35, %s1699_s29 }
 0x1a2   : > { %v2154_v21 = vpop.permute.xlu1 %574  ;;  %v2156_v24 = vpop.permute.xlu0 %572 }
 0x1a3   : > { %3114 = vst [vmem:[#allocation28_spill] sm:$0xff] %v2154_v21  ;;  %3115 = vst [vmem:[#allocation29_spill] sm:$0xff] %v2156_v24 }
 0x1a4   : > { %866 = vrot.lane.b32.xlu1 %v2120_v40, %s1699_s29  ;;  %864 = vrot.lane.b32.xlu0 %v2116_v39, %s1699_s29 }
 0x1a6   : > { %v2162_v16 = vpop.permute.xlu1 %606  ;;  %v2164_v47 = vpop.permute.xlu0 %604 }
 0x1a7   : > { %3116 = vst [vmem:[#allocation30_spill] sm:$0xff] %v2162_v16  ;;  %3117 = vst [vmem:[#allocation31_spill] sm:$0xff] %v2164_v47 }
 0x1a8   : > { %962 = vrot.lane.b32.xlu1 %v2104_v36, %s1700_s30  ;;  %960 = vrot.lane.b32.xlu0 %v2100_v35, %s1700_s30 }
 0x1aa   : > { %v2170_v46 = vpop.permute.xlu1 %702  ;;  %v2172_v17 = vpop.permute.xlu0 %700 }
 0x1ab   : > { %3118 = vst [vmem:[#allocation32_spill] sm:$0xff] %v2170_v46  ;;  %3119 = vst [vmem:[#allocation33_spill] sm:$0xff] %v2172_v17 }
 0x1ac   : > { %994 = vrot.lane.b32.xlu1 %v2120_v40, %s1700_s30  ;;  %992 = vrot.lane.b32.xlu0 %v2116_v39, %s1700_s30 }
 0x1ae   : > { %v2182_v47 = vpop.permute.xlu1 %734  ;;  %v2184_v16 = vpop.permute.xlu0 %732 }
 0x1af   : > { %3120 = vst [vmem:[#allocation34_spill] sm:$0xff] %v2182_v47  ;;  %3121 = vst [vmem:[#allocation35_spill] sm:$0xff] %v2184_v16 }
 0x1b0   : > { %1074 = vrot.lane.b32.xlu1 %v1872_v51, %s1701_s4  ;;  %588 = vrot.lane.b32.xlu0 %v2176_v8, %s1697_s27 }
 0x1b2   : > { %v2198_v42 = vpop.permute.xlu1 %830  ;;  %v2200_v47 = vpop.permute.xlu0 %828 }
 0x1b3   : > { %3123 = vst [vmem:[#allocation37_spill] sm:$0xff] %v2198_v42  ;;  %3124 = vst [vmem:[#allocation38_spill] sm:$0xff] %v2200_v47 }
 0x1b4   : > { %590 = vrot.lane.b32.xlu1 %v2196_v52, %s1697_s27  ;;  %620 = vrot.lane.b32.xlu0 %v2188_v44, %s1697_s27 }
 0x1b6   : > { %v2210_v16 = vpop.permute.xlu1 %862  ;;  %v2212_v9 = vpop.permute.xlu0 %860 }
 0x1b7   : > { %3126 = vst [vmem:[#allocation40_spill] sm:$0xff] %v2210_v16  ;;  %3127 = vst [vmem:[#allocation41_spill] sm:$0xff] %v2212_v9 }
 0x1b8   : > { %622 = vrot.lane.b32.xlu1 %v2208_v55, %s1697_s27  ;;  %716 = vrot.lane.b32.xlu0 %v2176_v8, %s1698_s28 }
 0x1ba   : > { %v2218_v54 = vpop.permute.xlu1 %958  ;;  %v2220_v4 = vpop.permute.xlu0 %956 }
 0x1bb   : > { %3128 = vst [vmem:[#allocation42_spill] sm:$0xff] %v2218_v54  ;;  %3129 = vst [vmem:[#allocation43_spill] sm:$0xff] %v2220_v4  ;;  %v2272_v4 = vadd.f32 %v1784_v19, %v1906_v56  ;;  %v2276_v54 = vadd.f32 %v1784_v19, %v1914_v59 }
 0x1bc   : > { %718 = vrot.lane.b32.xlu1 %v2196_v52, %s1698_s28  ;;  %748 = vrot.lane.b32.xlu0 %v2188_v44, %s1698_s28 }
 0x1be   : > { %v2226_v60 = vpop.permute.xlu1 %990  ;;  %v2228_v16 = vpop.permute.xlu0 %988 }
 0x1bf   : > { %3130 = vst [vmem:[#allocation44_spill] sm:$0xff] %v2226_v60  ;;  %3131 = vst [vmem:[#allocation45_spill] sm:$0xff] %v2228_v16 }
 0x1c0   : > { %750 = vrot.lane.b32.xlu1 %v2208_v55, %s1698_s28  ;;  %844 = vrot.lane.b32.xlu0 %v2176_v8, %s1699_s29 }
 0x1c2   : > { %v2234_v9 = vpop.permute.xlu1 %570  ;;  %v2236_v37 = vpop.permute.xlu0 %568 }
 0x1c3   : > { %3132 = vst [vmem:[#allocation46_spill] sm:$0xff] %v2234_v9  ;;  %3133 = vst [vmem:[#allocation47_spill] sm:$0xff] %v2236_v37 }
 0x1c4   : > { %846 = vrot.lane.b32.xlu1 %v2196_v52, %s1699_s29  ;;  %876 = vrot.lane.b32.xlu0 %v2188_v44, %s1699_s29 }
 0x1c6   : > { %v2242_v34 = vpop.permute.xlu1 %602  ;;  %v2244_v60 = vpop.permute.xlu0 %600 }
 0x1c7   : > { %3134 = vst [vmem:[#allocation48_spill] sm:$0xff] %v2242_v34  ;;  %3135 = vst [vmem:[#allocation49_spill] sm:$0xff] %v2244_v60  ;;  %v2260_v34 = vadd.f32 %v1784_v19, %v1896_v53 }
 0x1c8   : > { %878 = vrot.lane.b32.xlu1 %v2208_v55, %s1699_s29  ;;  %972 = vrot.lane.b32.xlu0 %v2176_v8, %s1700_s30 }
 0x1ca   : > { %v2250_v16 = vpop.permute.xlu1 %698  ;;  %v2252_v29 = vpop.permute.xlu0 %696 }
 0x1cb   : > { %3136 = vst [vmem:[#allocation50_spill] sm:$0xff] %v2250_v16  ;;  %3137 = vst [vmem:[#allocation51_spill] sm:$0xff] %v2252_v29 }
 0x1cc   : > { %974 = vrot.lane.b32.xlu1 %v2196_v52, %s1700_s30  ;;  %1004 = vrot.lane.b32.xlu0 %v2188_v44, %s1700_s30 }
 0x1ce   : > { %v2262_v60 = vpop.permute.xlu1 %730  ;;  %v2264_v28 = vpop.permute.xlu0 %728 }
 0x1cf   : > { %3138 = vst [vmem:[#allocation52_spill] sm:$0xff] %v2262_v60  ;;  %3139 = vst [vmem:[#allocation53_spill] sm:$0xff] %v2264_v28  ;;  %v2288_v28 = vadd.f32 %v1784_v19, %v1922_v61 }
 0x1d0   : > { %1006 = vrot.lane.b32.xlu1 %v2208_v55, %s1700_s30  ;;  %584 = vrot.lane.b32.xlu0 %v2260_v34, %s1697_s27 }
 0x1d2   : > { %v2278_v53 = vpop.permute.xlu1 %826  ;;  %v2280_v47 = vpop.permute.xlu0 %824 }
 0x1d3   : > { %3140 = vst [vmem:[#allocation54_spill] sm:$0xff] %v2278_v53  ;;  %3141 = vst [vmem:[#allocation55_spill] sm:$0xff] %v2280_v47 }
 0x1d4   : > { %586 = vrot.lane.b32.xlu1 %v2272_v4, %s1697_s27  ;;  %616 = vrot.lane.b32.xlu0 %v2276_v54, %s1697_s27 }
 0x1d6   : > { %v2290_v56 = vpop.permute.xlu1 %858  ;;  %v2292_v60 = vpop.permute.xlu0 %856 }
 0x1d7   : > { %3142 = vst [vmem:[#allocation56_spill] sm:$0xff] %v2290_v56  ;;  %3143 = vst [vmem:[#allocation57_spill] sm:$0xff] %v2292_v60 }
 0x1d8   : > { %618 = vrot.lane.b32.xlu1 %v2288_v28, %s1697_s27  ;;  %712 = vrot.lane.b32.xlu0 %v2260_v34, %s1698_s28 }
 0x1da   : > { %v2298_v59 = vpop.permute.xlu1 %954  ;;  %v2300_v42 = vpop.permute.xlu0 %952 }
 0x1db   : > { %3144 = vst [vmem:[#allocation58_spill] sm:$0xff] %v2298_v59  ;;  %3145 = vst [vmem:[#allocation59_spill] sm:$0xff] %v2300_v42 }
 0x1dc   : > { %714 = vrot.lane.b32.xlu1 %v2272_v4, %s1698_s28  ;;  %744 = vrot.lane.b32.xlu0 %v2276_v54, %s1698_s28 }
 0x1de   : > { %v2306_v19 = vpop.permute.xlu1 %986  ;;  %v2308_v61 = vpop.permute.xlu0 %984 }
 0x1df   : > { %3146 = vst [vmem:[#allocation60_spill] sm:$0xff] %v2306_v19  ;;  %3147 = vst [vmem:[#allocation61_spill] sm:$0xff] %v2308_v61 }
 0x1e0   : > { %746 = vrot.lane.b32.xlu1 %v2288_v28, %s1698_s28  ;;  %840 = vrot.lane.b32.xlu0 %v2260_v34, %s1699_s29 }
 0x1e2   : > { %v2314_v60 = vpop.permute.xlu1 %582  ;;  %v2316_v56 = vpop.permute.xlu0 %580 }
 0x1e3   : > { %3148 = vst [vmem:[#allocation62_spill] sm:$0xff] %v2314_v60  ;;  %3149 = vst [vmem:[#allocation63_spill] sm:$0xff] %v2316_v56 }
 0x1e4   : > { %842 = vrot.lane.b32.xlu1 %v2272_v4, %s1699_s29  ;;  %872 = vrot.lane.b32.xlu0 %v2276_v54, %s1699_s29 }
 0x1e6   : > { %v2322_v42 = vpop.permute.xlu1 %614  ;;  %v2324_v19 = vpop.permute.xlu0 %612 }
 0x1e7   : > { %3150 = vst [vmem:[#allocation64_spill] sm:$0xff] %v2322_v42  ;;  %3151 = vst [vmem:[#allocation65_spill] sm:$0xff] %v2324_v19 }
 0x1e8   : > { %874 = vrot.lane.b32.xlu1 %v2288_v28, %s1699_s29  ;;  %968 = vrot.lane.b32.xlu0 %v2260_v34, %s1700_s30 }
 0x1ea   : > { %v2330_v61 = vpop.permute.xlu1 %710  ;;  %v2332_v60 = vpop.permute.xlu0 %708 }
 0x1eb   : > { %3152 = vst [vmem:[#allocation66_spill] sm:$0xff] %v2330_v61  ;;  %3153 = vst [vmem:[#allocation67_spill] sm:$0xff] %v2332_v60 }
 0x1ec   : > { %970 = vrot.lane.b32.xlu1 %v2272_v4, %s1700_s30  ;;  %1000 = vrot.lane.b32.xlu0 %v2276_v54, %s1700_s30 }
 0x1ee   : > { %v2338_v56 = vpop.permute.xlu1 %742  ;;  %v2340_v42 = vpop.permute.xlu0 %740 }
 0x1ef   : > { %3154 = vst [vmem:[#allocation68_spill] sm:$0xff] %v2338_v56  ;;  %3155 = vst [vmem:[#allocation69_spill] sm:$0xff] %v2340_v42 }
 0x1f0   : > { %1002 = vrot.lane.b32.xlu1 %v2288_v28, %s1700_s30  ;;  %1072 = vrot.lane.b32.xlu0 %v1851_v48, %s1701_s4 }
 0x1f2   : > { %v2346_v19 = vpop.permute.xlu1 %838  ;;  %v2348_v61 = vpop.permute.xlu0 %836 }
 0x1f3   : > { %3156 = vst [vmem:[#allocation70_spill] sm:$0xff] %v2346_v19  ;;  %3157 = vst [vmem:[#allocation71_spill] sm:$0xff] %v2348_v61 }
 0x1f4   : > { %1078 = vrot.lane.b32.xlu1 %v1797_v30, %s1701_s4  ;;  %1076 = vrot.lane.b32.xlu0 %v1787_v22, %s1701_s4 }
 0x1f6   : > { %v2354_v60 = vpop.permute.xlu1 %870  ;;  %v2356_v56 = vpop.permute.xlu0 %868 }
 0x1f7   : > { %3158 = vst [vmem:[#allocation72_spill] sm:$0xff] %v2354_v60  ;;  %3159 = vst [vmem:[#allocation73_spill] sm:$0xff] %v2356_v56 }
 0x1f8   : > { %1082 = vrot.lane.b32.xlu1 %v1964_v1, %s1701_s4  ;;  %1080 = vrot.lane.b32.xlu0 %v1960_v0, %s1701_s4 }
 0x1fa   : > { %v2362_v42 = vpop.permute.xlu1 %966  ;;  %v2364_v19 = vpop.permute.xlu0 %964 }
 0x1fb   : > { %3160 = vst [vmem:[#allocation74_spill] sm:$0xff] %v2362_v42  ;;  %3161 = vst [vmem:[#allocation75_spill] sm:$0xff] %v2364_v19 }
 0x1fc   : > { %1086 = vrot.lane.b32.xlu1 %v1912_v58, %s1701_s4  ;;  %1084 = vrot.lane.b32.xlu0 %v1909_v57, %s1701_s4 }
 0x1fe   : > { %v2370_v61 = vpop.permute.xlu1 %998  ;;  %v2372_v60 = vpop.permute.xlu0 %996 }
 0x1ff   : > { %3162 = vst [vmem:[#allocation76_spill] sm:$0xff] %v2370_v61  ;;  %3163 = vst [vmem:[#allocation77_spill] sm:$0xff] %v2372_v60 }
 0x200   : > { %1090 = vrot.lane.b32.xlu1 %v2104_v36, %s1701_s4  ;;  %1088 = vrot.lane.b32.xlu0 %v2100_v35, %s1701_s4 }
 0x202   : > { %v2378_v56 = vpop.permute.xlu1 %578  ;;  %v2380_v42 = vpop.permute.xlu0 %576 }
 0x203   : > { %3164 = vst [vmem:[#allocation78_spill] sm:$0xff] %v2378_v56  ;;  %3165 = vst [vmem:[#allocation79_spill] sm:$0xff] %v2380_v42 }
 0x204   : > { %1094 = vrot.lane.b32.xlu1 %v2024_v11, %s1701_s4  ;;  %1092 = vrot.lane.b32.xlu0 %v2020_v10, %s1701_s4 }
 0x206   : > { %v2386_v19 = vpop.permute.xlu1 %610  ;;  %v2388_v61 = vpop.permute.xlu0 %608 }
 0x207   : > { %3166 = vst [vmem:[#allocation80_spill] sm:$0xff] %v2386_v19  ;;  %3167 = vst [vmem:[#allocation81_spill] sm:$0xff] %v2388_v61 }
 0x208   : > { %1098 = vrot.lane.b32.xlu1 %v2272_v4, %s1701_s4  ;;  %1096 = vrot.lane.b32.xlu0 %v2260_v34, %s1701_s4 }
 0x20a   : > { %v2394_v60 = vpop.permute.xlu1 %706  ;;  %v2396_v56 = vpop.permute.xlu0 %704 }
 0x20b   : > { %3168 = vst [vmem:[#allocation82_spill] sm:$0xff] %v2394_v60  ;;  %3169 = vst [vmem:[#allocation83_spill] sm:$0xff] %v2396_v56 }
 0x20c   : > { %1102 = vrot.lane.b32.xlu1 %v2196_v52, %s1701_s4  ;;  %1100 = vrot.lane.b32.xlu0 %v2176_v8, %s1701_s4 }
 0x20e   : > { %v2402_v42 = vpop.permute.xlu1 %738  ;;  %v2404_v19 = vpop.permute.xlu0 %736 }
 0x20f   : > { %3170 = vst [vmem:[#allocation84_spill] sm:$0xff] %v2402_v42  ;;  %3171 = vst [vmem:[#allocation85_spill] sm:$0xff] %v2404_v19 }
 0x210   : > { %1106 = vrot.lane.b32.xlu1 %v1865_v50, %s1701_s4  ;;  %1104 = vrot.lane.b32.xlu0 %v1858_v49, %s1701_s4 }
 0x212   : > { %v2410_v61 = vpop.permute.xlu1 %834  ;;  %v2412_v60 = vpop.permute.xlu0 %832 }
 0x213   : > { %3172 = vst [vmem:[#allocation86_spill] sm:$0xff] %v2410_v61  ;;  %3173 = vst [vmem:[#allocation87_spill] sm:$0xff] %v2412_v60 }
 0x214   : > { %1110 = vrot.lane.b32.xlu1 %v1804_v33, %s1701_s4  ;;  %1108 = vrot.lane.b32.xlu0 %v1790_v23, %s1701_s4 }
 0x216   : > { %v2418_v56 = vpop.permute.xlu1 %866  ;;  %v2420_v42 = vpop.permute.xlu0 %864 }
 0x217   : > { %3174 = vst [vmem:[#allocation88_spill] sm:$0xff] %v2418_v56  ;;  %3175 = vst [vmem:[#allocation89_spill] sm:$0xff] %v2420_v42 }
 0x218   : > { %1114 = vrot.lane.b32.xlu1 %v1976_v3, %s1701_s4  ;;  %1112 = vrot.lane.b32.xlu0 %v1972_v2, %s1701_s4 }
 0x21a   : > { %v2426_v19 = vpop.permute.xlu1 %962  ;;  %v2428_v61 = vpop.permute.xlu0 %960 }
 0x21b   : > { %3176 = vst [vmem:[#allocation90_spill] sm:$0xff] %v2426_v19  ;;  %3177 = vst [vmem:[#allocation91_spill] sm:$0xff] %v2428_v61 }
 0x21c   : > { %1118 = vrot.lane.b32.xlu1 %v1928_v63, %s1701_s4  ;;  %1116 = vrot.lane.b32.xlu0 %v1925_v62, %s1701_s4 }
 0x21e   : > { %v2434_v60 = vpop.permute.xlu1 %994  ;;  %v2436_v56 = vpop.permute.xlu0 %992 }
 0x21f   : > { %3178 = vst [vmem:[#allocation92_spill] sm:$0xff] %v2434_v60  ;;  %3179 = vst [vmem:[#allocation93_spill] sm:$0xff] %v2436_v56 }
 0x220   : > { %1122 = vrot.lane.b32.xlu1 %v2120_v40, %s1701_s4  ;;  %1120 = vrot.lane.b32.xlu0 %v2116_v39, %s1701_s4 }
 0x222   : > { %v2442_v42 = vpop.permute.xlu1 %1074  ;;  %v2444_v19 = vpop.permute.xlu0 %588 }
 0x223   : > { %3180 = vst [vmem:[#allocation94_spill] sm:$0xff] %v2442_v42  ;;  %3181 = vst [vmem:[#allocation95_spill] sm:$0xff] %v2444_v19 }
 0x224   : > { %1126 = vrot.lane.b32.xlu1 %v2040_v15, %s1701_s4  ;;  %1124 = vrot.lane.b32.xlu0 %v2036_v14, %s1701_s4 }
 0x226   : > { %v2450_v61 = vpop.permute.xlu1 %590  ;;  %v2452_v60 = vpop.permute.xlu0 %620 }
 0x227   : > { %3182 = vst [vmem:[#allocation96_spill] sm:$0xff] %v2450_v61  ;;  %3183 = vst [vmem:[#allocation97_spill] sm:$0xff] %v2452_v60 }
 0x228   : > { %1130 = vrot.lane.b32.xlu1 %v2288_v28, %s1701_s4  ;;  %1128 = vrot.lane.b32.xlu0 %v2276_v54, %s1701_s4 }
 0x22a   : > { %v2458_v56 = vpop.permute.xlu1 %622  ;;  %v2460_v59 = vpop.permute.xlu0 %716 }
 0x22b   : > { %3184 = vst [vmem:[#allocation98_spill] sm:$0xff] %v2458_v56  ;;  %3185 = vst [vmem:[#allocation99_spill] sm:$0xff] %v2460_v59 }
 0x22c   : > { %1134 = vrot.lane.b32.xlu1 %v2208_v55, %s1701_s4  ;;  %1132 = vrot.lane.b32.xlu0 %v2188_v44, %s1701_s4 }
 0x22e   : > { %v2466_v19 = vpop.permute.xlu1 %718  ;;  %v2468_v61 = vpop.permute.xlu0 %748 }
 0x22f   : > { %3186 = vst [vmem:[#allocation100_spill] sm:$0xff] %v2466_v19  ;;  %3187 = vst [vmem:[#allocation101_spill] sm:$0xff] %v2468_v61 }
 0x230   : > { %1202 = vrot.lane.b32.xlu1 %v1872_v51, %s1702_s5  ;;  %1200 = vrot.lane.b32.xlu0 %v1851_v48, %s1702_s5 }
 0x232   : > { %v2474_v56 = vpop.permute.xlu1 %750  ;;  %v2476_v60 = vpop.permute.xlu0 %844 }
 0x233   : > { %3188 = vst [vmem:[#allocation102_spill] sm:$0xff] %v2474_v56  ;;  %3189 = vst [vmem:[#allocation103_spill] sm:$0xff] %v2476_v60 }
 0x234   : > { %1206 = vrot.lane.b32.xlu1 %v1797_v30, %s1702_s5  ;;  %1204 = vrot.lane.b32.xlu0 %v1787_v22, %s1702_s5 }
 0x236   : > { %v2482_v19 = vpop.permute.xlu1 %846  ;;  %v2484_v61 = vpop.permute.xlu0 %876 }
 0x237   : > { %3190 = vst [vmem:[#allocation104_spill] sm:$0xff] %v2482_v19  ;;  %3191 = vst [vmem:[#allocation105_spill] sm:$0xff] %v2484_v61 }
 0x238   : > { %1210 = vrot.lane.b32.xlu1 %v1964_v1, %s1702_s5  ;;  %1208 = vrot.lane.b32.xlu0 %v1960_v0, %s1702_s5 }
 0x23a   : > { %v2490_v59 = vpop.permute.xlu1 %878  ;;  %v2492_v56 = vpop.permute.xlu0 %972 }
 0x23b   : > { %3192 = vst [vmem:[#allocation106_spill] sm:$0xff] %v2490_v59  ;;  %3193 = vst [vmem:[#allocation107_spill] sm:$0xff] %v2492_v56 }
 0x23c   : > { %1214 = vrot.lane.b32.xlu1 %v1912_v58, %s1702_s5  ;;  %1212 = vrot.lane.b32.xlu0 %v1909_v57, %s1702_s5 }
 0x23e   : > { %v2498_v60 = vpop.permute.xlu1 %974  ;;  %v2500_v19 = vpop.permute.xlu0 %1004 }
 0x23f   : > { %3194 = vst [vmem:[#allocation108_spill] sm:$0xff] %v2498_v60  ;;  %3195 = vst [vmem:[#allocation109_spill] sm:$0xff] %v2500_v19 }
 0x240   : > { %1218 = vrot.lane.b32.xlu1 %v2104_v36, %s1702_s5  ;;  %1216 = vrot.lane.b32.xlu0 %v2100_v35, %s1702_s5 }
 0x242   : > { %v2506_v61 = vpop.permute.xlu1 %1006  ;;  %v2508_v59 = vpop.permute.xlu0 %584 }
 0x243   : > { %3196 = vst [vmem:[#allocation110_spill] sm:$0xff] %v2506_v61  ;;  %3197 = vst [vmem:[#allocation111_spill] sm:$0xff] %v2508_v59 }
 0x244   : > { %1222 = vrot.lane.b32.xlu1 %v2024_v11, %s1702_s5  ;;  %1220 = vrot.lane.b32.xlu0 %v2020_v10, %s1702_s5 }
 0x246   : > { %v587_v56 = vpop.permute.xlu1 %586  ;;  %v2514_v60 = vpop.permute.xlu0 %616 }
 0x248   : > { %1226 = vrot.lane.b32.xlu1 %v2272_v4, %s1702_s5  ;;  %1224 = vrot.lane.b32.xlu0 %v2260_v34, %s1702_s5 }
 0x24a   : > { %v2520_v19 = vpop.permute.xlu1 %618  ;;  %v2522_v61 = vpop.permute.xlu0 %712 }
 0x24b   : > { %3198 = vst [vmem:[#allocation112_spill] sm:$0xff] %v2522_v61 }
 0x24c   : > { %1230 = vrot.lane.b32.xlu1 %v2196_v52, %s1702_s5  ;;  %1228 = vrot.lane.b32.xlu0 %v2176_v8, %s1702_s5 }
 0x24e   : > { %v715_v59 = vpop.permute.xlu1 %714  ;;  %v2528_v17 = vpop.permute.xlu0 %744 }
 0x250   : > { %1234 = vrot.lane.b32.xlu1 %v1865_v50, %s1702_s5  ;;  %1232 = vrot.lane.b32.xlu0 %v1858_v49, %s1702_s5 }
 0x252   : > { %v2534_v46 = vpop.permute.xlu1 %746  ;;  %v2536_v47 = vpop.permute.xlu0 %840 }
 0x253   : > { %3199 = vst [vmem:[#allocation113_spill] sm:$0xff] %v2536_v47 }
 0x254   : > { %1238 = vrot.lane.b32.xlu1 %v1804_v33, %s1702_s5  ;;  %1236 = vrot.lane.b32.xlu0 %v1790_v23, %s1702_s5 }
 0x256   : > { %v843_v61 = vpop.permute.xlu1 %842  ;;  %v2542_v53 = vpop.permute.xlu0 %872 }
 0x258   : > { %1242 = vrot.lane.b32.xlu1 %v1976_v3, %s1702_s5  ;;  %1240 = vrot.lane.b32.xlu0 %v1972_v2, %s1702_s5 }
 0x25a   : > { %v2548_v24 = vpop.permute.xlu1 %874  ;;  %v2550_v21 = vpop.permute.xlu0 %968 }
 0x25b   : > { %3200 = vst [vmem:[#allocation114_spill] sm:$0xff] %v2550_v21 }
 0x25c   : > { %1246 = vrot.lane.b32.xlu1 %v1928_v63, %s1702_s5  ;;  %1244 = vrot.lane.b32.xlu0 %v1925_v62, %s1702_s5 }
 0x25e   : > { %v971_v47 = vpop.permute.xlu1 %970  ;;  %v2556_v25 = vpop.permute.xlu0 %1000 }
 0x260   : > { %1250 = vrot.lane.b32.xlu1 %v2120_v40, %s1702_s5  ;;  %1248 = vrot.lane.b32.xlu0 %v2116_v39, %s1702_s5 }
 0x262   : > { %v2562_v29 = vpop.permute.xlu1 %1002  ;;  %v2564_v16 = vpop.permute.xlu0 %1072 }
 0x263   : > { %3201 = vst [vmem:[#allocation115_spill] sm:$0xff] %v2564_v16 }
 0x264   : > { %1254 = vrot.lane.b32.xlu1 %v2040_v15, %s1702_s5  ;;  %1252 = vrot.lane.b32.xlu0 %v2036_v14, %s1702_s5 }
 0x266   : > { %v2570_v21 = vpop.permute.xlu1 %1078  ;;  %v2572_v18 = vpop.permute.xlu0 %1076 }
 0x267   : > { %3202 = vst [vmem:[#allocation116_spill] sm:$0xff] %v2570_v21  ;;  %3203 = vst [vmem:[#allocation117_spill] sm:$0xff] %v2572_v18  ;;  %v669_v18 = vmax.f32 %v2272_v4, %v587_v56 }
 0x268   : > { %1258 = vrot.lane.b32.xlu1 %v2288_v28, %s1702_s5  ;;  %1256 = vrot.lane.b32.xlu0 %v2276_v54, %s1702_s5 }
 0x26a   : > { %v2578_v42 = vpop.permute.xlu1 %1082  ;;  %v2580_v20 = vpop.permute.xlu0 %1080 }
 0x26b   : > { %3204 = vst [vmem:[#allocation118_spill] sm:$0xff] %v2578_v42  ;;  %3205 = vst [vmem:[#allocation119_spill] sm:$0xff] %v2580_v20 }
 0x26c   : > { %1262 = vrot.lane.b32.xlu1 %v2208_v55, %s1702_s5  ;;  %1260 = vrot.lane.b32.xlu0 %v2188_v44, %s1702_s5 }
 0x26e   : > { %v2586_v16 = vpop.permute.xlu1 %1086  ;;  %v2588_v21 = vpop.permute.xlu0 %1084 }
 0x26f   : > { %3206 = vst [vmem:[#allocation120_spill] sm:$0xff] %v2586_v16  ;;  %3207 = vst [vmem:[#allocation121_spill] sm:$0xff] %v2588_v21  ;;  %v797_v21 = vmax.f32 %v669_v18, %v715_v59 }
 0x270   : > { %1330 = vrot.lane.b32.xlu1 %v1872_v51, %s1703_s6  ;;  %1328 = vrot.lane.b32.xlu0 %v1851_v48, %s1703_s6 }
 0x271   : > { %v925_v9 = vmax.f32 %v797_v21, %v843_v61 }
 0x272   : > { %v2594_v42 = vpop.permute.xlu1 %1090  ;;  %v2596_v20 = vpop.permute.xlu0 %1088 }
 0x273   : > { %3208 = vst [vmem:[#allocation122_spill] sm:$0xff] %v2594_v42  ;;  %3209 = vst [vmem:[#allocation123_spill] sm:$0xff] %v2596_v20  ;;  %v2611_v20 = vmax.f32 %v925_v9, %v971_v47 }
 0x274   : > { %1334 = vrot.lane.b32.xlu1 %v1797_v30, %s1703_s6  ;;  %1332 = vrot.lane.b32.xlu0 %v1787_v22, %s1703_s6 }
 0x276   : > { %v2603_v16 = vpop.permute.xlu1 %1094  ;;  %v2605_v37 = vpop.permute.xlu0 %1092 }
 0x278   : > { %1338 = vrot.lane.b32.xlu1 %v1964_v1, %s1703_s6  ;;  %1336 = vrot.lane.b32.xlu0 %v1960_v0, %s1703_s6 }
 0x27a   : > { %v2613_v56 = vpop.permute.xlu1 %1098  ;;  %v2615_v42 = vpop.permute.xlu0 %1096 }
 0x27c   : > { %1342 = vrot.lane.b32.xlu1 %v1912_v58, %s1703_s6  ;;  %1340 = vrot.lane.b32.xlu0 %v1909_v57, %s1703_s6 }
 0x27e   : > { %v2623_v21 = vpop.permute.xlu1 %1102  ;;  %v2625_v59 = vpop.permute.xlu0 %1100 }
 0x27f   : > { %3210 = vst [vmem:[#allocation124_spill] sm:$0xff] %v2623_v21  ;;  %3211 = vst [vmem:[#allocation125_spill] sm:$0xff] %v2625_v59 }
 0x280   : > { %1346 = vrot.lane.b32.xlu1 %v2104_v36, %s1703_s6  ;;  %1344 = vrot.lane.b32.xlu0 %v2100_v35, %s1703_s6 }
 0x282   : > { %v2631_v9 = vpop.permute.xlu1 %1106  ;;  %v2633_v47 = vpop.permute.xlu0 %1104 }
 0x283   : > { %3212 = vst [vmem:[#allocation126_spill] sm:$0xff] %v2631_v9  ;;  %3213 = vst [vmem:[#allocation127_spill] sm:$0xff] %v2633_v47 }
 0x284   : > { %1350 = vrot.lane.b32.xlu1 %v2024_v11, %s1703_s6  ;;  %1348 = vrot.lane.b32.xlu0 %v2020_v10, %s1703_s6 }
 0x286   : > { %v2639_v61 = vpop.permute.xlu1 %1110  ;;  %v2641_v18 = vpop.permute.xlu0 %1108 }
 0x287   : > { %3214 = vst [vmem:[#allocation128_spill] sm:$0xff] %v2639_v61  ;;  %3215 = vst [vmem:[#allocation129_spill] sm:$0xff] %v2641_v18  ;;  %v685_v18 = vmax.f32 %v2288_v28, %v2520_v19 }
 0x288   : > { %1354 = vrot.lane.b32.xlu1 %v2272_v4, %s1703_s6  ;;  %1352 = vrot.lane.b32.xlu0 %v2260_v34, %s1703_s6 }
 0x28a   : > { %v2647_v59 = vpop.permute.xlu1 %1114  ;;  %v2649_v9 = vpop.permute.xlu0 %1112 }
 0x28b   : > { %3216 = vst [vmem:[#allocation130_spill] sm:$0xff] %v2647_v59  ;;  %3217 = vst [vmem:[#allocation131_spill] sm:$0xff] %v2649_v9  ;;  %v684_v9 = vmax.f32 %v2276_v54, %v2514_v60 }
 0x28c   : > { %1358 = vrot.lane.b32.xlu1 %v2196_v52, %s1703_s6  ;;  %1356 = vrot.lane.b32.xlu0 %v2176_v8, %s1703_s6 }
 0x28e   : > { %v2655_v47 = vpop.permute.xlu1 %1118  ;;  %v2657_v61 = vpop.permute.xlu0 %1116 }
 0x28f   : > { %3218 = vst [vmem:[#allocation132_spill] sm:$0xff] %v2655_v47  ;;  %3219 = vst [vmem:[#allocation133_spill] sm:$0xff] %v2657_v61  ;;  %v812_v61 = vmax.f32 %v684_v9, %v2528_v17  ;;  %v813_v47 = vmax.f32 %v685_v18, %v2534_v46 }
 0x290   : > { %1362 = vrot.lane.b32.xlu1 %v1865_v50, %s1703_s6  ;;  %1360 = vrot.lane.b32.xlu0 %v1858_v49, %s1703_s6 }
 0x291   : > { %v941_v60 = vmax.f32 %v813_v47, %v2548_v24 }
 0x292   : > { %v2663_v4 = vpop.permute.xlu1 %1122  ;;  %v2665_v59 = vpop.permute.xlu0 %1120 }
 0x293   : > { %3220 = vst [vmem:[#allocation134_spill] sm:$0xff] %v2663_v4  ;;  %3221 = vst [vmem:[#allocation135_spill] sm:$0xff] %v2665_v59  ;;  %v940_v59 = vmax.f32 %v812_v61, %v2542_v53  ;;  %v2691_v17 = vmax.f32 %v941_v60, %v2562_v29 }
 0x294   : > { %1366 = vrot.lane.b32.xlu1 %v1804_v33, %s1703_s6  ;;  %1364 = vrot.lane.b32.xlu0 %v1790_v23, %s1703_s6 }
 0x295   : > { %v2688_v19 = vmax.f32 %v940_v59, %v2556_v25  ;;  %3225 = vst [vmem:[#allocation139_spill] sm:$0xff] %v2691_v17 }
 0x296   : > { %v2677_v21 = vpop.permute.xlu1 %1126  ;;  %v2679_v4 = vpop.permute.xlu0 %1124 }
 0x297   : > { %3222 = vst [vmem:[#allocation136_spill] sm:$0xff] %v2677_v21  ;;  %3223 = vst [vmem:[#allocation137_spill] sm:$0xff] %v2679_v4 }
 0x298   : > { %1370 = vrot.lane.b32.xlu1 %v1976_v3, %s1703_s6  ;;  %1368 = vrot.lane.b32.xlu0 %v1972_v2, %s1703_s6  ;;  %3224 = vst [vmem:[#allocation138_spill] sm:$0xff] %v2688_v19 }
 0x29a   : > { %v2693_v46 = vpop.permute.xlu1 %1130  ;;  %v2695_v18 = vpop.permute.xlu0 %1128 }
 0x29b   : > { %3226 = vst [vmem:[#allocation140_spill] sm:$0xff] %v2693_v46  ;;  %3227 = vst [vmem:[#allocation141_spill] sm:$0xff] %v2695_v18 }
 0x29c   : > { %1374 = vrot.lane.b32.xlu1 %v1928_v63, %s1703_s6  ;;  %1372 = vrot.lane.b32.xlu0 %v1925_v62, %s1703_s6  ;;  %v657_v63 = vmax.f32 %v1872_v51, %v2148_v27  ;;  %v658_v51 = vmax.f32 %v1787_v22, %v1996_v5  ;;  %v3240_v5 = vld [vmem:[#allocation46_spill] sm:$0xff] }
 0x29e   : > { %v2705_v25 = vpop.permute.xlu1 %1134  ;;  %v2707_v29 = vpop.permute.xlu0 %1132 }
 0x29f   : > { %3228 = vst [vmem:[#allocation142_spill] sm:$0xff] %v2705_v25  ;;  %3229 = vst [vmem:[#allocation143_spill] sm:$0xff] %v2707_v29 }
 0x2a0   : > { %1378 = vrot.lane.b32.xlu1 %v2120_v40, %s1703_s6  ;;  %1376 = vrot.lane.b32.xlu0 %v2116_v39, %s1703_s6 }
 0x2a2   : > { %v1203_v59 = vpop.permute.xlu1 %1202  ;;  %v1201_v9 = vpop.permute.xlu0 %1200 }
 0x2a4   : > { %1382 = vrot.lane.b32.xlu1 %v2040_v15, %s1703_s6  ;;  %1380 = vrot.lane.b32.xlu0 %v2036_v14, %s1703_s6 }
 0x2a6   : > { %v2717_v47 = vpop.permute.xlu1 %1206  ;;  %v2719_v61 = vpop.permute.xlu0 %1204 }
 0x2a8   : > { %1386 = vrot.lane.b32.xlu1 %v2288_v28, %s1703_s6  ;;  %1384 = vrot.lane.b32.xlu0 %v2276_v54, %s1703_s6 }
 0x2aa   : > { %v2725_v60 = vpop.permute.xlu1 %1210  ;;  %v2727_v24 = vpop.permute.xlu0 %1208 }
 0x2ac   : > { %1390 = vrot.lane.b32.xlu1 %v2208_v55, %s1703_s6  ;;  %1388 = vrot.lane.b32.xlu0 %v2188_v44, %s1703_s6 }
 0x2ae   : > { %v2733_v53 = vpop.permute.xlu1 %1214  ;;  %v2735_v29 = vpop.permute.xlu0 %1212 }
 0x2b2   : > { %v2737_v25 = vpop.permute.xlu1 %1218  ;;  %v2739_v28 = vpop.permute.xlu0 %1216 }
 0x2b6   : > { %v2741_v18 = vpop.permute.xlu1 %1222  ;;  %v2743_v54 = vpop.permute.xlu0 %1220 }
 0x2ba   : > { %v2745_v19 = vpop.permute.xlu1 %1226  ;;  %v2747_v46 = vpop.permute.xlu0 %1224 }
 0x2be   : > { %v2749_v17 = vpop.permute.xlu1 %1230  ;;  %v2751_v4 = vpop.permute.xlu0 %1228 }
 0x2c2   : > { %v2753_v21 = vpop.permute.xlu1 %1234  ;;  %v2755_v55 = vpop.permute.xlu0 %1232 }
 0x2c3   : > { %3230 = vst [vmem:[#allocation144_spill] sm:$0xff] %v2753_v21  ;;  %3231 = vst [vmem:[#allocation145_spill] sm:$0xff] %v2755_v55  ;;  %v785_v55 = vmax.f32 %v657_v63, %v2090_v32  ;;  %v659_v63 = vmax.f32 %v1797_v30, %v2004_v7  ;;  %v3244_v7 = vld [vmem:[#allocation13_spill] sm:$0xff] }
 0x2c6   : > { %v2757_v44 = vpop.permute.xlu1 %1238  ;;  %v2759_v14 = vpop.permute.xlu0 %1236 }
 0x2c7   : > { %3232 = vst [vmem:[#allocation146_spill] sm:$0xff] %v2757_v44  ;;  %3233 = vst [vmem:[#allocation147_spill] sm:$0xff] %v2759_v14 }
 0x2ca   : > { %v2761_v15 = vpop.permute.xlu1 %1242  ;;  %v2763_v39 = vpop.permute.xlu0 %1240 }
 0x2cb   : > { %3234 = vst [vmem:[#allocation148_spill] sm:$0xff] %v2763_v39  ;;  %v656_v39 = vmax.f32 %v1851_v48, %v2068_v26  ;;  %v787_v48 = vmax.f32 %v659_v63, %v2028_v13  ;;  %v3250_v63 = vld [vmem:[#allocation16_spill] sm:$0xff] }
 0x2ce   : > { %v2765_v40 = vpop.permute.xlu1 %1246  ;;  %v2767_v62 = vpop.permute.xlu0 %1244 }
 0x2cf   : > { %3235 = vst [vmem:[#allocation149_spill] sm:$0xff] %v2765_v40  ;;  %3236 = vst [vmem:[#allocation150_spill] sm:$0xff] %v2767_v62  ;;  %v784_v40 = vmax.f32 %v656_v39, %v2084_v31  ;;  %v913_v62 = vmax.f32 %v785_v55, %v2122_v41  ;;  %v661_v39 = vmax.f32 %v1964_v1, %v3240_v5  ;;  %v3241_v41 = vld [vmem:[#allocation47_spill] sm:$0xff] }
 0x2d0   : > { %v660_v55 = vmax.f32 %v1960_v0, %v3241_v41  ;;  %v3251_v0 = vld [vmem:[#allocation28_spill] sm:$0xff] }
 0x2d1   : > { %v912_v32 = vmax.f32 %v784_v40, %v2108_v38  ;;  %v1041_v31 = vmax.f32 %v913_v62, %v2138_v43  ;;  %v3245_v38 = vld [vmem:[#allocation94_spill] sm:$0xff]  ;;  %v3246_v40 = vld [vmem:[#allocation115_spill] sm:$0xff]  ;;  %v3247_v62 = vld [vmem:[#allocation12_spill] sm:$0xff]  ;;  %v663_v5 = vmax.f32 %v1912_v58, %v3251_v0 }
 0x2d2   : > { %v2771_v2 = vpop.permute.xlu1 %1250  ;;  %v2773_v21 = vpop.permute.xlu0 %1248  ;;  %v3255_v58 = vld [vmem:[#allocation116_spill] sm:$0xff]  ;;  %v3262_v0 = vld [vmem:[#allocation38_spill] sm:$0xff] }
 0x2d3   : > { %3237 = vst [vmem:[#allocation151_spill] sm:$0xff] %v2773_v21  ;;  %v1040_v26 = vmax.f32 %v912_v32, %v2132_v45  ;;  %v1169_v13 = vmax.f32 %v1041_v31, %v3245_v38  ;;  %v3253_v31 = vld [vmem:[#allocation54_spill] sm:$0xff] }
 0x2d5   : > { %v1168_v45 = vmax.f32 %v1040_v26, %v3246_v40  ;;  %v1297_v41 = vmax.f32 %v1169_v13, %v1203_v59  ;;  %v3254_v26 = vld [vmem:[#allocation55_spill] sm:$0xff]  ;;  %v3258_v40 = vld [vmem:[#allocation33_spill] sm:$0xff] }
 0x2d6   : > { %v2776_v44 = vpop.permute.xlu1 %1254  ;;  %v2778_v14 = vpop.permute.xlu0 %1252 }
 0x2d7   : > { %3238 = vst [vmem:[#allocation152_spill] sm:$0xff] %v2778_v14  ;;  %v786_v14 = vmax.f32 %v658_v51, %v2002_v6  ;;  %v915_v6 = vmax.f32 %v787_v48, %v3244_v7  ;;  %v3249_v51 = vld [vmem:[#allocation51_spill] sm:$0xff] }
 0x2d8   : > { %v788_v1 = vmax.f32 %v660_v55, %v3249_v51 }
 0x2d9   : > { %v914_v22 = vmax.f32 %v786_v14, %v2026_v12  ;;  %v3248_v12 = vld [vmem:[#allocation50_spill] sm:$0xff]  ;;  %v1043_v32 = vmax.f32 %v915_v6, %v3250_v63 }
 0x2da   : > { %v2786_v27 = vpop.permute.xlu1 %1258  ;;  %v2788_v21 = vpop.permute.xlu0 %1256  ;;  %v789_v14 = vmax.f32 %v661_v39, %v3248_v12  ;;  %v916_v38 = vmax.f32 %v788_v1, %v3254_v26  ;;  %v3265_v26 = vld [vmem:[#allocation118_spill] sm:$0xff] }
 0x2db   : > { %3239 = vst [vmem:[#allocation153_spill] sm:$0xff] %v2788_v21  ;;  %v1042_v43 = vmax.f32 %v914_v22, %v3247_v62  ;;  %v1171_v59 = vmax.f32 %v1043_v32, %v3255_v58  ;;  %v3259_v62 = vld [vmem:[#allocation58_spill] sm:$0xff]  ;;  %v3261_v32 = vld [vmem:[#allocation37_spill] sm:$0xff] }
 0x2dc   : > { %v917_v7 = vmax.f32 %v789_v14, %v3253_v31  ;;  %v3260_v14 = vld [vmem:[#allocation59_spill] sm:$0xff] }
 0x2dd   : > { %v1044_v51 = vmax.f32 %v916_v38, %v3260_v14  ;;  %v1299_v1 = vmax.f32 %v1171_v59, %v2717_v47  ;;  %v3266_v38 = vld [vmem:[#allocation119_spill] sm:$0xff]  ;;  %v3267_v59 = vld [vmem:[#allocation82_spill] sm:$0xff] }
 0x2de   : > { %v2802_v21 = vpop.permute.xlu1 %1262  ;;  %v2804_v30 = vpop.permute.xlu0 %1260  ;;  %v1045_v12 = vmax.f32 %v917_v7, %v3259_v62 }
 0x2df   : > { %3242 = vst [vmem:[#allocation46_spill] sm:$0xff] %v2802_v21  ;;  %3243 = vst [vmem:[#allocation47_spill] sm:$0xff] %v2804_v30  ;;  %v1296_v30 = vmax.f32 %v1168_v45, %v1201_v9  ;;  %v3252_v21 = vld [vmem:[#allocation29_spill] sm:$0xff] }
 0x2e0   : > { %v662_v48 = vmax.f32 %v1909_v57, %v3252_v21  ;;  %v3256_v9 = vld [vmem:[#allocation117_spill] sm:$0xff]  ;;  %v3257_v21 = vld [vmem:[#allocation32_spill] sm:$0xff] }
 0x2e1   : > { %v1170_v55 = vmax.f32 %v1042_v43, %v3256_v9  ;;  %v791_v13 = vmax.f32 %v663_v5, %v3257_v21  ;;  %v3263_v5 = vld [vmem:[#allocation78_spill] sm:$0xff] }
 0x2e2   : > { %v1331_v22 = vpop.permute.xlu1 %1330  ;;  %v1329_v39 = vpop.permute.xlu0 %1328  ;;  %v790_v45 = vmax.f32 %v662_v48, %v3258_v40  ;;  %v3264_v48 = vld [vmem:[#allocation79_spill] sm:$0xff] }
 0x2e3   : > { %v1425_v6 = vmax.f32 %v1297_v41, %v1331_v22  ;;  %v1424_v57 = vmax.f32 %v1296_v30, %v1329_v39  ;;  %v1298_v63 = vmax.f32 %v1170_v55, %v2719_v61  ;;  %v919_v43 = vmax.f32 %v791_v13, %v3261_v32  ;;  %v3268_v55 = vld [vmem:[#allocation83_spill] sm:$0xff] }
 0x2e4   : > { %v918_v30 = vmax.f32 %v790_v45, %v3262_v0  ;;  %v665_v41 = vmax.f32 %v2104_v36, %v3263_v5  ;;  %v664_v31 = vmax.f32 %v2100_v35, %v3264_v48  ;;  %v1173_v61 = vmax.f32 %v1045_v12, %v3265_v26  ;;  %v3270_v13 = vld [vmem:[#allocation43_spill] sm:$0xff]  ;;  %v3271_v45 = vld [vmem:[#allocation62_spill] sm:$0xff]  ;;  %v3275_v0 = vld [vmem:[#allocation120_spill] sm:$0xff] }
 0x2e5   : > { %1458 = vst.msk [vmem:[%s2823_s10 + $0x8] sm:$0xff] %vm1456_vm1, %v1425_v6  ;;  %1457 = vst.msk [vmem:[%s2823_s10] sm:$0xff] %vm1456_vm1, %v1424_v57  ;;  %v1172_v22 = vmax.f32 %v1044_v51, %v3266_v38  ;;  %v3269_v57 = vld [vmem:[#allocation42_spill] sm:$0xff]  ;;  %v667_v62 = vmax.f32 %v2024_v11, %v3271_v45  ;;  %v3272_v12 = vld [vmem:[#allocation63_spill] sm:$0xff] }
 0x2e6   : > { %v1335_v7 = vpop.permute.xlu1 %1334  ;;  %v1333_v47 = vpop.permute.xlu0 %1332  ;;  %v793_v9 = vmax.f32 %v665_v41, %v3267_v59  ;;  %v792_v6 = vmax.f32 %v664_v31, %v3268_v55  ;;  %v1047_v21 = vmax.f32 %v919_v43, %v3269_v57  ;;  %v1046_v40 = vmax.f32 %v918_v30, %v3270_v13  ;;  %v3273_v51 = vld [vmem:[#allocation86_spill] sm:$0xff]  ;;  %v3276_v30 = vld [vmem:[#allocation121_spill] sm:$0xff]  ;;  %v3278_v11 = vld [vmem:[#allocation67_spill] sm:$0xff] }
 0x2e7   : > { %v1427_v39 = vmax.f32 %v1299_v1, %v1335_v7  ;;  %v1426_v58 = vmax.f32 %v1298_v63, %v1333_v47  ;;  %v1301_v36 = vmax.f32 %v1173_v61, %v2725_v60  ;;  %v1300_v35 = vmax.f32 %v1172_v22, %v2727_v24  ;;  %v3274_v63 = vld [vmem:[#allocation87_spill] sm:$0xff]  ;;  %v3277_v31 = vld [vmem:[#allocation66_spill] sm:$0xff] }
 0x2e8   : > { %v666_v14 = vmax.f32 %v2020_v10, %v3272_v12  ;;  %v921_v1 = vmax.f32 %v793_v9, %v3273_v51  ;;  %v920_v32 = vmax.f32 %v792_v6, %v3274_v63  ;;  %v1175_v24 = vmax.f32 %v1047_v21, %v3275_v0  ;;  %v3279_v26 = vld [vmem:[#allocation90_spill] sm:$0xff]  ;;  %v3280_v10 = vld [vmem:[#allocation91_spill] sm:$0xff]  ;;  %v3290_v0 = vld [vmem:[#allocation96_spill] sm:$0xff] }
 0x2e9   : > { %1460 = vst.msk [vmem:[%s2823_s10 + $0x18] sm:$0xff] %vm1456_vm1, %v1427_v39  ;;  %1459 = vst.msk [vmem:[%s2823_s10 + $0x10] sm:$0xff] %vm1456_vm1, %v1426_v58  ;;  %v1174_v5 = vmax.f32 %v1046_v40, %v3276_v30  ;;  %v795_v7 = vmax.f32 %v667_v62, %v3277_v31  ;;  %v3281_v58 = vld [vmem:[#allocation70_spill] sm:$0xff]  ;;  %v3282_v9 = vld [vmem:[#allocation71_spill] sm:$0xff] }
 0x2ea   : > { %v1339_v43 = vpop.permute.xlu1 %1338  ;;  %v1337_v60 = vpop.permute.xlu0 %1336  ;;  %v794_v47 = vmax.f32 %v666_v14, %v3278_v11  ;;  %v1049_v61 = vmax.f32 %v921_v1, %v3279_v26  ;;  %v1048_v38 = vmax.f32 %v920_v32, %v3280_v10  ;;  %v1303_v22 = vmax.f32 %v1175_v24, %v2733_v53  ;;  %v3283_v6 = vld [vmem:[#allocation111_spill] sm:$0xff]  ;;  %v3284_v40 = vld [vmem:[#allocation122_spill] sm:$0xff]  ;;  %v3286_v62 = vld [vmem:[#allocation112_spill] sm:$0xff] }
 0x2eb   : > { %v1429_v41 = vmax.f32 %v1301_v36, %v1339_v43  ;;  %v1428_v48 = vmax.f32 %v1300_v35, %v1337_v60  ;;  %v1302_v39 = vmax.f32 %v1174_v5, %v2735_v29  ;;  %v923_v59 = vmax.f32 %v795_v7, %v3281_v58  ;;  %v3285_v53 = vld [vmem:[#allocation123_spill] sm:$0xff]  ;;  %v3287_v14 = vld [vmem:[#allocation74_spill] sm:$0xff]  ;;  %v3291_v30 = vld [vmem:[#allocation113_spill] sm:$0xff] }
 0x2ec   : > { %v922_v55 = vmax.f32 %v794_v47, %v3282_v9  ;;  %v668_v57 = vmax.f32 %v2260_v34, %v3283_v6  ;;  %v1177_v36 = vmax.f32 %v1049_v61, %v3284_v40  ;;  %v1176_v35 = vmax.f32 %v1048_v38, %v3285_v53  ;;  %v3288_v1 = vld [vmem:[#allocation75_spill] sm:$0xff]  ;;  %v3293_v26 = vld [vmem:[#allocation100_spill] sm:$0xff]  ;;  %v3294_v10 = vld [vmem:[#allocation114_spill] sm:$0xff] }
 0x2ed   : > { %1462 = vst.msk [vmem:[%s2823_s10 + $0x28] sm:$0xff] %vm1456_vm1, %v1429_v41  ;;  %1461 = vst.msk [vmem:[%s2823_s10 + $0x20] sm:$0xff] %vm1456_vm1, %v1428_v48  ;;  %v1051_v51 = vmax.f32 %v923_v59, %v3287_v14  ;;  %v3289_v34 = vld [vmem:[#allocation95_spill] sm:$0xff]  ;;  %v671_v24 = vmax.f32 %v2196_v52, %v3290_v0  ;;  %v3298_v6 = vld [vmem:[#allocation104_spill] sm:$0xff] }
 0x2ee   : > { %v1343_v21 = vpop.permute.xlu1 %1342  ;;  %v1341_v13 = vpop.permute.xlu0 %1340  ;;  %v796_v12 = vmax.f32 %v668_v57, %v3286_v62  ;;  %v1050_v63 = vmax.f32 %v922_v55, %v3288_v1  ;;  %v1305_v32 = vmax.f32 %v1177_v36, %v2737_v25  ;;  %v1304_v43 = vmax.f32 %v1176_v35, %v2739_v28  ;;  %v3292_v11 = vld [vmem:[#allocation99_spill] sm:$0xff]  ;;  %v3300_v36 = vld [vmem:[#allocation21_spill] sm:$0xff] }
 0x2ef   : > { %v1431_v29 = vmax.f32 %v1303_v22, %v1343_v21  ;;  %v1430_v45 = vmax.f32 %v1302_v39, %v1341_v13  ;;  %v670_v60 = vmax.f32 %v2176_v8, %v3289_v34  ;;  %v1179_v25 = vmax.f32 %v1051_v51, %v2603_v16  ;;  %v3295_v22 = vld [vmem:[#allocation18_spill] sm:$0xff]  ;;  %v3297_v58 = vld [vmem:[#allocation103_spill] sm:$0xff]  ;;  %v3299_v13 = vld [vmem:[#allocation20_spill] sm:$0xff] }
 0x2f0   : > { %v924_v5 = vmax.f32 %v796_v12, %v3291_v30  ;;  %v1178_v28 = vmax.f32 %v1050_v63, %v2605_v37  ;;  %v799_v61 = vmax.f32 %v671_v24, %v3293_v26  ;;  %v672_v16 = vmax.f32 %v1858_v49, %v3295_v22  ;;  %v3296_v37 = vld [vmem:[#allocation19_spill] sm:$0xff]  ;;  %v3306_v63 = vld [vmem:[#allocation24_spill] sm:$0xff] }
 0x2f1   : > { %1464 = vst.msk [vmem:[%s2823_s10 + $0x38] sm:$0xff] %vm1456_vm1, %v1431_v29  ;;  %1463 = vst.msk [vmem:[%s2823_s10 + $0x30] sm:$0xff] %vm1456_vm1, %v1430_v45  ;;  %v798_v47 = vmax.f32 %v670_v60, %v3292_v11  ;;  %v1307_v8 = vmax.f32 %v1179_v25, %v2741_v18  ;;  %v673_v39 = vmax.f32 %v1865_v50, %v3296_v37  ;;  %v3301_v35 = vld [vmem:[#allocation107_spill] sm:$0xff]  ;;  %v3302_v29 = vld [vmem:[#allocation108_spill] sm:$0xff] }
 0x2f2   : > { %v1347_v41 = vpop.permute.xlu1 %1346  ;;  %v1345_v48 = vpop.permute.xlu0 %1344  ;;  %v1052_v38 = vmax.f32 %v924_v5, %v3294_v10  ;;  %v1306_v52 = vmax.f32 %v1178_v28, %v2743_v54  ;;  %v927_v18 = vmax.f32 %v799_v61, %v3298_v6  ;;  %v800_v40 = vmax.f32 %v672_v16, %v3299_v13  ;;  %v3305_v51 = vld [vmem:[#allocation7_spill] sm:$0xff]  ;;  %v3309_v60 = vld [vmem:[#allocation125_spill] sm:$0xff]  ;;  %v3310_v5 = vld [vmem:[#allocation6_spill] sm:$0xff] }
 0x2f3   : > { %v1433_v31 = vmax.f32 %v1305_v32, %v1347_v41  ;;  %v1432_v7 = vmax.f32 %v1304_v43, %v1345_v48  ;;  %v926_v59 = vmax.f32 %v798_v47, %v3297_v58  ;;  %v801_v53 = vmax.f32 %v673_v39, %v3300_v36  ;;  %v3307_v43 = vld [vmem:[#allocation25_spill] sm:$0xff]  ;;  %v3312_v25 = vld [vmem:[#allocation26_spill] sm:$0xff]  ;;  %v3315_v61 = vld [vmem:[#allocation15_spill] sm:$0xff] }
 0x2f4   : > { %v1180_v54 = vmax.f32 %v1052_v38, %v2615_v42  ;;  %v1055_v45 = vmax.f32 %v927_v18, %v3302_v29  ;;  %v3303_v50 = vmax.f32 %v2611_v20, %v2613_v56  ;;  %v3304_v42 = vld [vmem:[#allocation5_spill] sm:$0xff]  ;;  %v675_v1 = vmax.f32 %v1804_v33, %v3305_v51  ;;  %v3313_v33 = vld [vmem:[#allocation27_spill] sm:$0xff]  ;;  %v3314_v47 = vld [vmem:[#allocation10_spill] sm:$0xff] }
 0x2f5   : > { %1466 = vst.msk [vmem:[%s2823_s10 + $0x48] sm:$0xff] %vm1456_vm1, %v1433_v31  ;;  %1465 = vst.msk [vmem:[%s2823_s10 + $0x40] sm:$0xff] %vm1456_vm1, %v1432_v7  ;;  %v1054_v49 = vmax.f32 %v926_v59, %v3301_v35  ;;  %v674_v14 = vmax.f32 %v1790_v23, %v3304_v42  ;;  %v928_v32 = vmax.f32 %v800_v40, %v3306_v63  ;;  %v3311_v23 = vld [vmem:[#allocation11_spill] sm:$0xff]  ;;  %v3316_v38 = vld [vmem:[#allocation48_spill] sm:$0xff] }
 0x2f6   : > { %v1351_v9 = vpop.permute.xlu1 %1350  ;;  %v1349_v55 = vpop.permute.xlu0 %1348  ;;  %v1309_v62 = vmax.f32 %v3303_v50, %v2745_v19  ;;  %v1308_v12 = vmax.f32 %v1180_v54, %v2747_v46  ;;  %v929_v34 = vmax.f32 %v801_v53, %v3307_v43  ;;  %v3308_v19 = vld [vmem:[#allocation124_spill] sm:$0xff]  ;;  %v803_v48 = vmax.f32 %v675_v1, %v3311_v23  ;;  %v3319_v39 = vld [vmem:[#allocation126_spill] sm:$0xff]  ;;  %v3320_v58 = vld [vmem:[#allocation127_spill] sm:$0xff] }
 0x2f7   : > { %v1435_v57 = vmax.f32 %v1307_v8, %v1351_v9  ;;  %v1434_v21 = vmax.f32 %v1306_v52, %v1349_v55  ;;  %v1183_v46 = vmax.f32 %v1055_v45, %v3308_v19  ;;  %v1182_v0 = vmax.f32 %v1054_v49, %v3309_v60  ;;  %v3317_v52 = vld [vmem:[#allocation49_spill] sm:$0xff]  ;;  %v3318_v22 = vld [vmem:[#allocation4_spill] sm:$0xff]  ;;  %v3327_v29 = vld [vmem:[#allocation30_spill] sm:$0xff] }
 0x2f8   : > { %v802_v41 = vmax.f32 %v674_v14, %v3310_v5  ;;  %v1056_v28 = vmax.f32 %v928_v32, %v3312_v25  ;;  %v1057_v31 = vmax.f32 %v929_v34, %v3313_v33  ;;  %v931_v10 = vmax.f32 %v803_v48, %v3315_v61  ;;  %v3321_v6 = vld [vmem:[#allocation52_spill] sm:$0xff]  ;;  %v3322_v54 = vld [vmem:[#allocation53_spill] sm:$0xff]  ;;  %v3328_v45 = vld [vmem:[#allocation3_spill] sm:$0xff] }
 0x2f9   : > { %1468 = vst.msk [vmem:[%s2823_s10 + $0x58] sm:$0xff] %vm1456_vm1, %v1435_v57  ;;  %1467 = vst.msk [vmem:[%s2823_s10 + $0x50] sm:$0xff] %vm1456_vm1, %v1434_v21  ;;  %v1311_v7 = vmax.f32 %v1183_v46, %v2749_v17  ;;  %v1310_v11 = vmax.f32 %v1182_v0, %v2751_v4  ;;  %v677_v8 = vmax.f32 %v1976_v3, %v3316_v38  ;;  %v3323_v21 = vld [vmem:[#allocation14_spill] sm:$0xff]  ;;  %v3324_v40 = vld [vmem:[#allocation17_spill] sm:$0xff] }
 0x2fa   : > { %v1355_v20 = vpop.permute.xlu1 %1354  ;;  %v1353_v56 = vpop.permute.xlu0 %1352  ;;  %v930_v26 = vmax.f32 %v802_v41, %v3314_v47  ;;  %v676_v16 = vmax.f32 %v3318_v22, %v3317_v52  ;;  %v1185_v4 = vmax.f32 %v1057_v31, %v3319_v39  ;;  %v1184_v59 = vmax.f32 %v1056_v28, %v3320_v58  ;;  %v3325_v3 = vld [vmem:[#allocation144_spill] sm:$0xff]  ;;  %v3326_v35 = vld [vmem:[#allocation145_spill] sm:$0xff]  ;;  %v3335_v0 = vld [vmem:[#allocation34_spill] sm:$0xff] }
 0x2fb   : > { %v1437_v24 = vmax.f32 %v1309_v62, %v1355_v20  ;;  %v1436_v30 = vmax.f32 %v1308_v12, %v1353_v56  ;;  %v805_v18 = vmax.f32 %v677_v8, %v3321_v6  ;;  %v1059_v36 = vmax.f32 %v931_v10, %v3324_v40  ;;  %v3329_v62 = vld [vmem:[#allocation31_spill] sm:$0xff]  ;;  %v3330_v12 = vld [vmem:[#allocation2_spill] sm:$0xff]  ;;  %v3331_v14 = vld [vmem:[#allocation56_spill] sm:$0xff] }
 0x2fc   : > { %v804_v57 = vmax.f32 %v676_v16, %v3322_v54  ;;  %v1058_v13 = vmax.f32 %v930_v26, %v3323_v21  ;;  %v1313_v53 = vmax.f32 %v1185_v4, %v3325_v3  ;;  %v1312_v49 = vmax.f32 %v1184_v59, %v3326_v35  ;;  %v3332_v1 = vld [vmem:[#allocation57_spill] sm:$0xff]  ;;  %v3333_v34 = vld [vmem:[#allocation128_spill] sm:$0xff]  ;;  %v3339_v28 = vld [vmem:[#allocation146_spill] sm:$0xff] }
 0x2fd   : > { %1470 = vst.msk [vmem:[%s2823_s10 + $0x68] sm:$0xff] %vm1456_vm1, %v1437_v24  ;;  %1469 = vst.msk [vmem:[%s2823_s10 + $0x60] sm:$0xff] %vm1456_vm1, %v1436_v30  ;;  %v679_v50 = vmax.f32 %v3328_v45, %v3327_v29  ;;  %v678_v42 = vmax.f32 %v3330_v12, %v3329_v62  ;;  %v933_v51 = vmax.f32 %v805_v18, %v3331_v14  ;;  %v3334_v56 = vld [vmem:[#allocation129_spill] sm:$0xff]  ;;  %v3336_v30 = vld [vmem:[#allocation35_spill] sm:$0xff] }
 0x2fe   : > { %v1359_v37 = vpop.permute.xlu1 %1358  ;;  %v1357_v17 = vpop.permute.xlu0 %1356  ;;  %v932_v63 = vmax.f32 %v804_v57, %v3332_v1  ;;  %v1187_v20 = vmax.f32 %v1059_v36, %v3333_v34  ;;  %v1186_v19 = vmax.f32 %v1058_v13, %v3334_v56  ;;  %v3337_v41 = vld [vmem:[#allocation60_spill] sm:$0xff]  ;;  %v3338_v48 = vld [vmem:[#allocation61_spill] sm:$0xff]  ;;  %v3340_v31 = vld [vmem:[#allocation147_spill] sm:$0xff] }
 0x2ff   : > { %v1439_v9 = vmax.f32 %v1311_v7, %v1359_v37  ;;  %v1438_v55 = vmax.f32 %v1310_v11, %v1357_v17  ;;  %v807_v24 = vmax.f32 %v679_v50, %v3335_v0  ;;  %v806_v5 = vmax.f32 %v678_v42, %v3336_v30  ;;  %v3341_v11 = vld [vmem:[#allocation40_spill] sm:$0xff]  ;;  %v3342_v26 = vld [vmem:[#allocation41_spill] sm:$0xff]  ;;  %v3344_v38 = vld [vmem:[#allocation23_spill] sm:$0xff] }
 0x300   : > { %v1061_v23 = vmax.f32 %v933_v51, %v3337_v41  ;;  %v1060_v25 = vmax.f32 %v932_v63, %v3338_v48  ;;  %v1315_v33 = vmax.f32 %v1187_v20, %v3339_v28  ;;  %v1314_v7 = vmax.f32 %v1186_v19, %v3340_v31  ;;  %v3343_v10 = vld [vmem:[#allocation80_spill] sm:$0xff]  ;;  %v3345_v52 = vld [vmem:[#allocation81_spill] sm:$0xff]  ;;  %v3346_v22 = vld [vmem:[#allocation22_spill] sm:$0xff] }
 0x301   : > { %1472 = vst.msk [vmem:[%s2823_s10 + $0x78] sm:$0xff] %vm1456_vm1, %v1439_v9  ;;  %1471 = vst.msk [vmem:[%s2823_s10 + $0x70] sm:$0xff] %vm1456_vm1, %v1438_v55  ;;  %v935_v47 = vmax.f32 %v807_v24, %v3341_v11  ;;  %v934_v61 = vmax.f32 %v806_v5, %v3342_v26  ;;  %v681_v8 = vmax.f32 %v3344_v38, %v3343_v10  ;;  %v3347_v39 = vld [vmem:[#allocation130_spill] sm:$0xff]  ;;  %v3348_v58 = vld [vmem:[#allocation131_spill] sm:$0xff] }
 0x302   : > { %v1363_v32 = vpop.permute.xlu1 %1362  ;;  %v1361_v43 = vpop.permute.xlu0 %1360  ;;  %v680_v16 = vmax.f32 %v3346_v22, %v3345_v52  ;;  %v1189_v4 = vmax.f32 %v1061_v23, %v3347_v39  ;;  %v1188_v59 = vmax.f32 %v1060_v25, %v3348_v58  ;;  %v3349_v6 = vld [vmem:[#allocation84_spill] sm:$0xff]  ;;  %v3350_v54 = vld [vmem:[#allocation85_spill] sm:$0xff]  ;;  %v3367_v28 = vld [vmem:[#allocation150_spill] sm:$0xff] }
 0x303   : > { %v1441_v46 = vmax.f32 %v1313_v53, %v1363_v32  ;;  %v1440_v60 = vmax.f32 %v1312_v49, %v1361_v43  ;;  %v809_v18 = vmax.f32 %v681_v8, %v3349_v6  ;;  %v3351_v21 = vld [vmem:[#allocation44_spill] sm:$0xff]  ;;  %v3352_v40 = vld [vmem:[#allocation45_spill] sm:$0xff]  ;;  %v3370_v10 = vld [vmem:[#allocation134_spill] sm:$0xff] }
 0x304   : > { %v808_v57 = vmax.f32 %v680_v16, %v3350_v54  ;;  %v1063_v13 = vmax.f32 %v935_v47, %v3351_v21  ;;  %v1062_v36 = vmax.f32 %v934_v61, %v3352_v40  ;;  %v1317_v3 = vmax.f32 %v1189_v4, %v2761_v15  ;;  %v3353_v53 = vld [vmem:[#allocation148_spill] sm:$0xff]  ;;  %v3355_v29 = vld [vmem:[#allocation9_spill] sm:$0xff]  ;;  %v3371_v8 = vld [vmem:[#allocation135_spill] sm:$0xff] }
 0x305   : > { %1474 = vst.msk [vmem:[%s2823_s10 + $0x88] sm:$0xff] %vm1456_vm1, %v1441_v46  ;;  %1473 = vst.msk [vmem:[%s2823_s10 + $0x80] sm:$0xff] %vm1456_vm1, %v1440_v60  ;;  %v1316_v35 = vmax.f32 %v1188_v59, %v3353_v53  ;;  %v3354_v49 = vld [vmem:[#allocation64_spill] sm:$0xff]  ;;  %v3356_v50 = vld [vmem:[#allocation65_spill] sm:$0xff] }
 0x306   : > { %v1367_v37 = vpop.permute.xlu1 %1366  ;;  %v1365_v17 = vpop.permute.xlu0 %1364  ;;  %v683_v45 = vmax.f32 %v3355_v29, %v3354_v49  ;;  %v3357_v62 = vld [vmem:[#allocation8_spill] sm:$0xff]  ;;  %v3359_v51 = vld [vmem:[#allocation89_spill] sm:$0xff]  ;;  %v3374_v59 = vld [vmem:[#allocation151_spill] sm:$0xff] }
 0x307   : > { %v1443_v9 = vmax.f32 %v1315_v33, %v1367_v37  ;;  %v1442_v55 = vmax.f32 %v1314_v7, %v1365_v17  ;;  %v682_v12 = vmax.f32 %v3357_v62, %v3356_v50  ;;  %v3358_v42 = vld [vmem:[#allocation88_spill] sm:$0xff]  ;;  %v936_v1 = vmax.f32 %v808_v57, %v3359_v51  ;;  %v3361_v34 = vld [vmem:[#allocation133_spill] sm:$0xff]  ;;  %v3377_v54 = vld [vmem:[#allocation98_spill] sm:$0xff] }
 0x308   : > { %v937_v14 = vmax.f32 %v809_v18, %v3358_v42  ;;  %v3360_v32 = vld [vmem:[#allocation132_spill] sm:$0xff]  ;;  %v1190_v20 = vmax.f32 %v1062_v36, %v3361_v34  ;;  %v3363_v0 = vld [vmem:[#allocation69_spill] sm:$0xff]  ;;  %v3378_v57 = vld [vmem:[#allocation39_spill] sm:$0xff] }
 0x309   : > { %1476 = vst.msk [vmem:[%s2823_s10 + $0x98] sm:$0xff] %vm1456_vm1, %v1443_v9  ;;  %1475 = vst.msk [vmem:[%s2823_s10 + $0x90] sm:$0xff] %vm1456_vm1, %v1442_v55  ;;  %v1191_v43 = vmax.f32 %v1063_v13, %v3360_v32  ;;  %v3362_v46 = vld [vmem:[#allocation68_spill] sm:$0xff]  ;;  %v810_v24 = vmax.f32 %v682_v12, %v3363_v0  ;;  %v3365_v41 = vld [vmem:[#allocation93_spill] sm:$0xff]  ;;  %v687_v21 = vmax.f32 %v3378_v57, %v3377_v54 }
 0x30a   : > { %v1371_v63 = vpop.permute.xlu1 %1370  ;;  %v1369_v15 = vpop.permute.xlu0 %1368  ;;  %v811_v60 = vmax.f32 %v683_v45, %v3362_v46  ;;  %v3364_v30 = vld [vmem:[#allocation92_spill] sm:$0xff]  ;;  %v1064_v23 = vmax.f32 %v936_v1, %v3365_v41  ;;  %v3366_v48 = vld [vmem:[#allocation149_spill] sm:$0xff]  ;;  %v1318_v33 = vmax.f32 %v1190_v20, %v3367_v28  ;;  %v3382_v50 = vld [vmem:[#allocation102_spill] sm:$0xff] }
 0x30b   : > { %v1445_v56 = vmax.f32 %v1317_v3, %v1371_v63  ;;  %v1444_v19 = vmax.f32 %v1316_v35, %v1369_v15  ;;  %v1065_v5 = vmax.f32 %v937_v14, %v3364_v30  ;;  %v1319_v25 = vmax.f32 %v1191_v43, %v3366_v48  ;;  %v3368_v31 = vld [vmem:[#allocation72_spill] sm:$0xff]  ;;  %v3369_v11 = vld [vmem:[#allocation73_spill] sm:$0xff]  ;;  %v3385_v32 = vld [vmem:[#allocation106_spill] sm:$0xff] }
 0x30c   : > { %v939_v7 = vmax.f32 %v811_v60, %v3368_v31  ;;  %v938_v47 = vmax.f32 %v810_v24, %v3369_v11  ;;  %v1192_v52 = vmax.f32 %v1064_v23, %v3371_v8  ;;  %v3372_v37 = vld [vmem:[#allocation76_spill] sm:$0xff]  ;;  %v3373_v39 = vld [vmem:[#allocation77_spill] sm:$0xff]  ;;  %v815_v62 = vmax.f32 %v687_v21, %v3382_v50  ;;  %v3387_v46 = vld [vmem:[#allocation110_spill] sm:$0xff] }
 0x30d   : > { %1478 = vst.msk [vmem:[%s2823_s10 + $0xa8] sm:$0xff] %vm1456_vm1, %v1445_v56  ;;  %1477 = vst.msk [vmem:[%s2823_s10 + $0xa0] sm:$0xff] %vm1456_vm1, %v1444_v19  ;;  %v1193_v38 = vmax.f32 %v1065_v5, %v3370_v10  ;;  %v3375_v55 = vld [vmem:[#allocation97_spill] sm:$0xff]  ;;  %v3376_v6 = vld [vmem:[#allocation36_spill] sm:$0xff] }
 0x30e   : > { %v1375_v26 = vpop.permute.xlu1 %1374  ;;  %v1373_v61 = vpop.permute.xlu0 %1372  ;;  %v1067_v17 = vmax.f32 %v939_v7, %v3372_v37  ;;  %v1066_v4 = vmax.f32 %v938_v47, %v3373_v39  ;;  %v1320_v9 = vmax.f32 %v1192_v52, %v3374_v59  ;;  %v686_v18 = vmax.f32 %v3376_v6, %v3375_v55  ;;  %v3379_v36 = vld [vmem:[#allocation136_spill] sm:$0xff]  ;;  %v3380_v53 = vld [vmem:[#allocation137_spill] sm:$0xff]  ;;  %v3388_v60 = vld [vmem:[#allocation139_spill] sm:$0xff] }
 0x30f   : > { %v1447_v22 = vmax.f32 %v1319_v25, %v1375_v26  ;;  %v1446_v16 = vmax.f32 %v1318_v33, %v1373_v61  ;;  %v1321_v58 = vmax.f32 %v1193_v38, %v2771_v2  ;;  %v3381_v29 = vld [vmem:[#allocation101_spill] sm:$0xff]  ;;  %v3383_v42 = vld [vmem:[#allocation152_spill] sm:$0xff]  ;;  %v943_v43 = vmax.f32 %v815_v62, %v3385_v32  ;;  %v3392_v41 = vld [vmem:[#allocation138_spill] sm:$0xff] }
 0x310   : > { %v1195_v3 = vmax.f32 %v1067_v17, %v3379_v36  ;;  %v1194_v2 = vmax.f32 %v1066_v4, %v3380_v53  ;;  %v814_v45 = vmax.f32 %v686_v18, %v3381_v29  ;;  %v3384_v63 = vld [vmem:[#allocation105_spill] sm:$0xff]  ;;  %v3389_v0 = vld [vmem:[#allocation140_spill] sm:$0xff]  ;;  %v3395_v31 = vld [vmem:[#allocation142_spill] sm:$0xff] }
 0x311   : > { %1480 = vst.msk [vmem:[%s2823_s10 + $0xb8] sm:$0xff] %vm1456_vm1, %v1447_v22  ;;  %1479 = vst.msk [vmem:[%s2823_s10 + $0xb0] sm:$0xff] %vm1456_vm1, %v1446_v16  ;;  %v3386_v56 = vld [vmem:[#allocation109_spill] sm:$0xff]  ;;  %v3390_v24 = vmax.f32 %v3388_v60, %v3389_v0  ;;  %v3396_v11 = vld [vmem:[#allocation143_spill] sm:$0xff] }
 0x312   : > { %v1379_v13 = vpop.permute.xlu1 %1378  ;;  %v1377_v40 = vpop.permute.xlu0 %1376  ;;  %v1323_v12 = vmax.f32 %v1195_v3, %v2776_v44  ;;  %v1322_v14 = vmax.f32 %v1194_v2, %v3383_v42  ;;  %v942_v15 = vmax.f32 %v814_v45, %v3384_v63  ;;  %v1071_v44 = vmax.f32 %v943_v43, %v3387_v46  ;;  %v3391_v5 = vld [vmem:[#allocation153_spill] sm:$0xff]  ;;  %v3398_v38 = vld [vmem:[#allocation47_spill] sm:$0xff] }
 0x313   : > { %v1449_v35 = vmax.f32 %v1321_v58, %v1379_v13  ;;  %v1448_v49 = vmax.f32 %v1320_v9, %v1377_v40  ;;  %v1325_v30 = vmax.f32 %v3390_v24, %v2786_v27  ;;  %v3393_v23 = vld [vmem:[#allocation141_spill] sm:$0xff]  ;;  %v3397_v27 = vld [vmem:[#allocation46_spill] sm:$0xff] }
 0x314   : > { %v1070_v19 = vmax.f32 %v942_v15, %v3386_v56  ;;  %v3394_v48 = vmax.f32 %v3392_v41, %v3393_v23  ;;  %v1199_v7 = vmax.f32 %v1071_v44, %v3395_v31 }
 0x315   : > { %1482 = vst.msk [vmem:[%s2823_s10 + $0xc8] sm:$0xff] %vm1456_vm1, %v1449_v35  ;;  %1481 = vst.msk [vmem:[%s2823_s10 + $0xc0] sm:$0xff] %vm1456_vm1, %v1448_v49 }
 0x316   : > { %v1383_v51 = vpop.permute.xlu1 %1382  ;;  %v1381_v1 = vpop.permute.xlu0 %1380  ;;  %v1324_v25 = vmax.f32 %v3394_v48, %v3391_v5  ;;  %v1198_v47 = vmax.f32 %v1070_v19, %v3396_v11  ;;  %v1327_v10 = vmax.f32 %v1199_v7, %v3397_v27 }
 0x317   : > { %v1451_v34 = vmax.f32 %v1323_v12, %v1383_v51  ;;  %v1450_v20 = vmax.f32 %v1322_v14, %v1381_v1 }
 0x318   : > { %v1326_v8 = vmax.f32 %v1198_v47, %v3398_v38 }
 0x319   : > { %1484 = vst.msk [vmem:[%s2823_s10 + $0xd8] sm:$0xff] %vm1456_vm1, %v1451_v34  ;;  %1483 = vst.msk [vmem:[%s2823_s10 + $0xd0] sm:$0xff] %vm1456_vm1, %v1450_v20 }
 0x31a   : > { %v1387_v28 = vpop.permute.xlu1 %1386  ;;  %v1385_v33 = vpop.permute.xlu0 %1384 }
 0x31b   : > { %v1453_v26 = vmax.f32 %v1325_v30, %v1387_v28  ;;  %v1452_v61 = vmax.f32 %v1324_v25, %v1385_v33 }
 0x31d   : > { %1486 = vst.msk [vmem:[%s2823_s10 + $0xe8] sm:$0xff] %vm1456_vm1, %v1453_v26  ;;  %1485 = vst.msk [vmem:[%s2823_s10 + $0xe0] sm:$0xff] %vm1456_vm1, %v1452_v61 }
 0x31e   : > { %v1391_v52 = vpop.permute.xlu1 %1390  ;;  %v1389_v22 = vpop.permute.xlu0 %1388 }
 0x31f   : > { %v1455_v16 = vmax.f32 %v1327_v10, %v1391_v52  ;;  %v1454_v37 = vmax.f32 %v1326_v8, %v1389_v22 }
 0x321   : > { %1488 = vst.msk [vmem:[%s2823_s10 + $0xf8] sm:$0xff] %vm1456_vm1, %v1455_v16  ;;  %1487 = vst.msk [vmem:[%s2823_s10 + $0xf0] sm:$0xff] %vm1456_vm1, %v1454_v37 }
 0x322 PF: > { %s13_s12 = sadd.s32 1, %s1695_s12  }
 0x323   : > { %p10_p4 = scmp.ge.s32.totalorder %s13_s12, 4  }
 0x325   :  { %12 = sbr.rel (!%p10_p4) target bundleno = 1 (0x1), region = 62 }

</bundles_post_ra>
